<compile_context>
chip_gen: v5e
topology: v5e:2x2
jax: 0.10.0
libtpu: 0.0.40
codegen_flags: <defaults>
</compile_context>

<pallas_src>
import jax
import jax.numpy as jnp
from jax import lax
from jax.experimental import pallas as pl
from jax.experimental.pallas import tpu as pltpu  # noqa: F401  (TPU backend)

EPS = 1e-5


def _edge_kernel(x_ref, w0_ref, gb0_ref, w1_ref, gb1_ref, o_ref):
    # ---- fc0: [B,512](bf16) @ [512,512](bf16) -> f32.  Bias omitted: it is
    # cancelled exactly by the BN mean subtraction below. ----
    h = jnp.dot(x_ref[...], w0_ref[...], preferred_element_type=jnp.float32)

    # ---- BatchNorm1d(512), training-mode batch statistics ----
    mean0 = jnp.mean(h, axis=0, keepdims=True)
    c0 = h - mean0                                         # centered, reused
    var0 = jnp.mean(c0 * c0, axis=0, keepdims=True)
    scale0 = gb0_ref[0:1, :] * lax.rsqrt(var0 + EPS)       # gamma folded, [1,512]
    h = c0 * scale0 + gb0_ref[1:2, :]

    # ---- ReLU ----
    h = jnp.maximum(h, 0.0)

    # ---- fc1: [B,512](bf16) @ [512,256](bf16) -> f32 (bias omitted) ----
    y = jnp.dot(h.astype(jnp.bfloat16), w1_ref[...],
                preferred_element_type=jnp.float32)

    # ---- BatchNorm1d(256), training-mode batch statistics ----
    mean1 = jnp.mean(y, axis=0, keepdims=True)
    c1 = y - mean1
    var1 = jnp.mean(c1 * c1, axis=0, keepdims=True)
    scale1 = gb1_ref[0:1, :] * lax.rsqrt(var1 + EPS)       # [1,256]
    o_ref[...] = (c1 * scale1 + gb1_ref[1:2, :]).astype(o_ref.dtype)


def edge_module_forward(x, kernel_params):
    """x: [B, 512] float32. Returns [B, 256] float32."""
    B = x.shape[0]
    w0_t, gb0, w1_t, gb1 = kernel_params
    x_bf16 = x.astype(jnp.bfloat16)

    def full_spec(shape):
        return pl.BlockSpec(shape, lambda: (0,) * len(shape))

    return pl.pallas_call(
        _edge_kernel,
        out_shape=jax.ShapeDtypeStruct((B, 256), jnp.float32),
        in_specs=[
            full_spec(x_bf16.shape),   # x          [B, 512]   bf16
            full_spec(w0_t.shape),     # W0^T       [512, 512] bf16
            full_spec(gb0.shape),      # gamma/beta [2, 512]   f32
            full_spec(w1_t.shape),     # W1^T       [512, 256] bf16
            full_spec(gb1.shape),      # gamma/beta [2, 256]   f32
        ],
        out_specs=full_spec((B, 256)),
    )(x_bf16, w0_t, gb0, w1_t, gb1)


# ---------------------------------------------------------------------------
# Parameters / references
# ---------------------------------------------------------------------------

def make_params(key):
    """Deterministic synthetic parameters in native PyTorch shapes."""
    k0, k1, k2, k3, k4, k5 = jax.random.split(key, 6)
    # nn.Linear(512, 512): weight [512, 512], bias [512]
    w0 = jax.random.normal(k0, (512, 512), jnp.float32) * 0.02
    b0 = jax.random.normal(k1, (512,), jnp.float32) * 0.02
    # nn.BatchNorm1d(512): gamma, beta (slightly perturbed, deterministic)
    g0 = 1.0 + 0.1 * jax.random.normal(k2, (512,), jnp.float32)
    be0 = 0.1 * jax.random.normal(k3, (512,), jnp.float32)
    # nn.Linear(512, 256): weight [256, 512], bias [256]
    w1 = jax.random.normal(k4, (256, 512), jnp.float32) * 0.02
    b1 = jax.random.normal(k5, (256,), jnp.float32) * 0.02
    # nn.BatchNorm1d(256)
    g1 = jnp.ones((256,), jnp.float32)
    be1 = jnp.zeros((256,), jnp.float32)
    return (w0, b0, g0, be0, w1, b1, g1, be1)


def pack_kernel_params(params):
    """PyTorch-shaped params -> kernel layout.

    Biases b0/b1 are dropped (cancelled exactly by BN mean subtraction).
    Weights are pre-transposed to [in, out] and cast to bf16 so the HBM copy
    is half-size; gamma/beta are packed as rows of one [2, F] f32 array.
    """
    w0, _b0, g0, be0, w1, _b1, g1, be1 = params
    return (
        w0.T.astype(jnp.bfloat16),          # [512, 512] bf16
        jnp.stack([g0, be0], axis=0),       # [2, 512]   f32 (row0=gamma, row1=beta)
        w1.T.astype(jnp.bfloat16),          # [512, 256] bf16
        jnp.stack([g1, be1], axis=0),       # [2, 256]   f32
    )


def reference_forward_f32(x, params):
    """Exact EdgeModule.forward in f32 (training-mode BN, biases included)."""
    w0, b0, g0, be0, w1, b1, g1, be1 = params
    h = x @ w0.T + b0
    m = jnp.mean(h, axis=0, keepdims=True)
    v = jnp.mean((h - m) ** 2, axis=0, keepdims=True)
    h = (h - m) / jnp.sqrt(v + EPS) * g0 + be0
    h = jnp.maximum(h, 0.0)
    y = h @ w1.T + b1
    m1 = jnp.mean(y, axis=0, keepdims=True)
    v1 = jnp.mean((y - m1) ** 2, axis=0, keepdims=True)
    return (y - m1) / jnp.sqrt(v1 + EPS) * g1 + be1


def reference_forward_bf16(x, kernel_params):
    """Pure-JAX reference of the kernel math (bf16 matmuls, f32 accumulation)."""
    w0_t, gb0, w1_t, gb1 = kernel_params
    h = jnp.dot(x.astype(jnp.bfloat16), w0_t, preferred_element_type=jnp.float32)
    m = jnp.mean(h, axis=0, keepdims=True)
    c = h - m
    v = jnp.mean(c * c, axis=0, keepdims=True)
    h = c * (gb0[0:1] * lax.rsqrt(v + EPS)) + gb0[1:2]
    h = jnp.maximum(h, 0.0)
    y = jnp.dot(h.astype(jnp.bfloat16), w1_t, preferred_element_type=jnp.float32)
    m1 = jnp.mean(y, axis=0, keepdims=True)
    c1 = y - m1
    v1 = jnp.mean(c1 * c1, axis=0, keepdims=True)
    return c1 * (gb1[0:1] * lax.rsqrt(v1 + EPS)) + gb1[1:2]


if __name__ == "__main__":
    key = jax.random.PRNGKey(0)
    kx, kp = jax.random.split(key)

    B = 8  # NOTE: PyTorch BatchNorm1d requires B > 1 in training mode.
    x = jax.random.normal(kx, (B, 512), jnp.float32)
    params = make_params(kp)
    kparams = pack_kernel_params(params)

    out = edge_module_forward(x, kparams)
    out = jax.block_until_ready(out)
    assert out.shape == (B, 256), out.shape

    # Tight check against a reference that does the same bf16-matmul math.
    ref_bf = reference_forward_bf16(x, kparams)
    err_bf = float(jnp.max(jnp.abs(out - ref_bf)))
    assert jnp.allclose(out, ref_bf, atol=2e-3, rtol=2e-3), err_bf

    # Looser check against the exact f32 PyTorch semantics (biases included);
    # slack accounts only for bf16 matmul-input precision.
    ref32 = reference_forward_f32(x, params)
    err32 = float(jnp.max(jnp.abs(out - ref32)))
    assert jnp.allclose(out, ref32, atol=8e-2, rtol=8e-2), err32

    print("KERNEL_OK")
</pallas_src>

<mosaic_0001>
module attributes {stable_mosaic.version = 11 : i64} {
  func.func @_edge_kernel(%arg0: memref<8x512xbf16, #tpu.memory_space<vmem>>, %arg1: memref<512x512xbf16, #tpu.memory_space<vmem>>, %arg2: memref<2x512xf32, #tpu.memory_space<vmem>>, %arg3: memref<512x256xbf16, #tpu.memory_space<vmem>>, %arg4: memref<2x256xf32, #tpu.memory_space<vmem>>, %arg5: memref<8x256xf32, #tpu.memory_space<vmem>>) attributes {dimension_semantics = [], scalar_prefetch = 0 : i64, scratch_operands = 0 : i64, tpu.core_type = #tpu.core_type<tc>} {
    %c0 = arith.constant 0 : index
    %c0_0 = arith.constant 0 : index
    %0 = vector.load %arg0[%c0, %c0_0] : memref<8x512xbf16, #tpu.memory_space<vmem>>, vector<8x512xbf16>
    %c0_1 = arith.constant 0 : index
    %c0_2 = arith.constant 0 : index
    %1 = vector.load %arg1[%c0_1, %c0_2] : memref<512x512xbf16, #tpu.memory_space<vmem>>, vector<512x512xbf16>
    %cst = arith.constant dense<0.000000e+00> : vector<8x512xf32>
    %2 = tpu.matmul %0, %1, %cst {dimension_numbers = #tpu.dot_dimension_numbers<[1], [0], [0], [1], [0, 0, 1, 1], [], []>} : vector<8x512xbf16>, vector<512x512xbf16>, vector<8x512xf32> -> vector<8x512xf32>
    %cst_3 = arith.constant dense<0.000000e+00> : vector<512xf32>
    %3 = vector.multi_reduction <add>, %2, %cst_3 [0] : vector<8x512xf32> to vector<512xf32>
    %4 = vector.shape_cast %3 : vector<512xf32> to vector<1x512xf32>
    %cst_4 = arith.constant 8.000000e+00 : f32
    %5 = vector.broadcast %cst_4 : f32 to vector<1x512xf32>
    %6 = arith.divf %4, %5 : vector<1x512xf32>
    %7 = vector.broadcast %6 : vector<1x512xf32> to vector<8x512xf32>
    %8 = arith.subf %2, %7 : vector<8x512xf32>
    %9 = arith.mulf %8, %8 : vector<8x512xf32>
    %cst_5 = arith.constant dense<0.000000e+00> : vector<512xf32>
    %10 = vector.multi_reduction <add>, %9, %cst_5 [0] : vector<8x512xf32> to vector<512xf32>
    %11 = vector.shape_cast %10 : vector<512xf32> to vector<1x512xf32>
    %cst_6 = arith.constant 8.000000e+00 : f32
    %12 = vector.broadcast %cst_6 : f32 to vector<1x512xf32>
    %13 = arith.divf %11, %12 : vector<1x512xf32>
    %c0_7 = arith.constant 0 : index
    %c0_8 = arith.constant 0 : index
    %14 = vector.load %arg2[%c0_7, %c0_8] : memref<2x512xf32, #tpu.memory_space<vmem>>, vector<1x512xf32>
    %cst_9 = arith.constant 9.99999974E-6 : f32
    %15 = vector.broadcast %cst_9 : f32 to vector<1x512xf32>
    %16 = arith.addf %13, %15 : vector<1x512xf32>
    %17 = math.rsqrt %16 : vector<1x512xf32>
    %18 = arith.mulf %14, %17 : vector<1x512xf32>
    %19 = vector.broadcast %18 : vector<1x512xf32> to vector<8x512xf32>
    %20 = arith.mulf %8, %19 : vector<8x512xf32>
    %c1 = arith.constant 1 : index
    %c0_10 = arith.constant 0 : index
    %21 = vector.load %arg2[%c1, %c0_10] : memref<2x512xf32, #tpu.memory_space<vmem>>, vector<1x512xf32>
    %22 = vector.broadcast %21 : vector<1x512xf32> to vector<8x512xf32>
    %23 = arith.addf %20, %22 : vector<8x512xf32>
    %cst_11 = arith.constant 0.000000e+00 : f32
    %24 = vector.broadcast %cst_11 : f32 to vector<8x512xf32>
    %25 = arith.maximumf %23, %24 : vector<8x512xf32>
    %26 = arith.truncf %25 : vector<8x512xf32> to vector<8x512xbf16>
    %c0_12 = arith.constant 0 : index
    %c0_13 = arith.constant 0 : index
    %27 = vector.load %arg3[%c0_12, %c0_13] : memref<512x256xbf16, #tpu.memory_space<vmem>>, vector<512x256xbf16>
    %cst_14 = arith.constant dense<0.000000e+00> : vector<8x256xf32>
    %28 = tpu.matmul %26, %27, %cst_14 {dimension_numbers = #tpu.dot_dimension_numbers<[1], [0], [0], [1], [0, 0, 1, 1], [], []>} : vector<8x512xbf16>, vector<512x256xbf16>, vector<8x256xf32> -> vector<8x256xf32>
    %cst_15 = arith.constant dense<0.000000e+00> : vector<256xf32>
    %29 = vector.multi_reduction <add>, %28, %cst_15 [0] : vector<8x256xf32> to vector<256xf32>
    %30 = vector.shape_cast %29 : vector<256xf32> to vector<1x256xf32>
    %cst_16 = arith.constant 8.000000e+00 : f32
    %31 = vector.broadcast %cst_16 : f32 to vector<1x256xf32>
    %32 = arith.divf %30, %31 : vector<1x256xf32>
    %33 = vector.broadcast %32 : vector<1x256xf32> to vector<8x256xf32>
    %34 = arith.subf %28, %33 : vector<8x256xf32>
    %35 = arith.mulf %34, %34 : vector<8x256xf32>
    %cst_17 = arith.constant dense<0.000000e+00> : vector<256xf32>
    %36 = vector.multi_reduction <add>, %35, %cst_17 [0] : vector<8x256xf32> to vector<256xf32>
    %37 = vector.shape_cast %36 : vector<256xf32> to vector<1x256xf32>
    %cst_18 = arith.constant 8.000000e+00 : f32
    %38 = vector.broadcast %cst_18 : f32 to vector<1x256xf32>
    %39 = arith.divf %37, %38 : vector<1x256xf32>
    %c0_19 = arith.constant 0 : index
    %c0_20 = arith.constant 0 : index
    %40 = vector.load %arg4[%c0_19, %c0_20] : memref<2x256xf32, #tpu.memory_space<vmem>>, vector<1x256xf32>
    %cst_21 = arith.constant 9.99999974E-6 : f32
    %41 = vector.broadcast %cst_21 : f32 to vector<1x256xf32>
    %42 = arith.addf %39, %41 : vector<1x256xf32>
    %43 = math.rsqrt %42 : vector<1x256xf32>
    %44 = arith.mulf %40, %43 : vector<1x256xf32>
    %45 = vector.broadcast %44 : vector<1x256xf32> to vector<8x256xf32>
    %46 = arith.mulf %34, %45 : vector<8x256xf32>
    %c1_22 = arith.constant 1 : index
    %c0_23 = arith.constant 0 : index
    %47 = vector.load %arg4[%c1_22, %c0_23] : memref<2x256xf32, #tpu.memory_space<vmem>>, vector<1x256xf32>
    %48 = vector.broadcast %47 : vector<1x256xf32> to vector<8x256xf32>
    %49 = arith.addf %46, %48 : vector<8x256xf32>
    %c0_24 = arith.constant 0 : index
    %c0_25 = arith.constant 0 : index
    %50 = vector.load %arg5[%c0_24, %c0_25] : memref<8x256xf32, #tpu.memory_space<vmem>>, vector<8x256xf32>
    tpu.vector_store %arg5[%c0_24, %c0_25], %49 {strides = array<i32>} : memref<8x256xf32, #tpu.memory_space<vmem>>, vector<8x256xf32>,
    return
  }
}

</mosaic_0001>

<bundles_post_ra>
// kernel: tpu_custom_call.1
= control target key start
LH: loop header
LB: loop body
LE: loop exit
PB: predicated region body
PF: predicated region fallthrough
CT: control target
= control target key end

     0   :  { %10 = vsyncpa [#allocation3], 0  ;;  %s3177_s0 = inlined_call_operand.hbm [shape: bf16[8,512], index: 0, kind: input, shape index: {}]   ;;  %s3178_s1 = inlined_call_operand.hbm [shape: bf16[512,512], index: 1, kind: input, shape index: {}]   ;;  %s3179_s2 = inlined_call_operand.hbm [shape: f32[2,512], index: 2, kind: input, shape index: {}]   ;;  %s3180_s3 = inlined_call_operand.hbm [shape: bf16[512,256], index: 3, kind: input, shape index: {}]   ;;  %s3181_s4 = inlined_call_operand.hbm [shape: f32[2,256], index: 4, kind: input, shape index: {}]   ;;  %s3182_s5 = inlined_call_operand.hbm [shape: f32[8,256], index: 5, kind: output, shape index: {}]  }
   0x1   :  { %11 = vsyncpa [#allocation6], 0 }
   0x2   :  { %12 = vsyncpa [#allocation9], 0  ;;  %s29_s20 = sshll.u32 %s3178_s1, 4  ;;  %s30_s20 = int_to_ptr.hbm [resolvable:$true] %s29_s20 }
   0x3   :  { %13 = vsyncpa [#allocation4], 0  ;;  %s2975_s21 = smov [#allocation5]   ;;  %s53_s25 = sshll.u32 %s3180_s3, 4  ;;  %s54_s25 = int_to_ptr.hbm [resolvable:$true] %s53_s25 }
   0x4   :  { %s31_s22 = sshll.u32 %s2975_s21, 4  ;;  %s2976_s26 = smov 256   ;;  %s32_s22 = int_to_ptr.vmem [resolvable:$true] %s31_s22 }
   0x5   :  { %s2977_s27 = smov 16   ;;  %s2978_s28 = smov [#allocation8]  }
   0x6   :  { %37 = dma.hbm_to_vmem [thread:$0]  %s30_s20, 16384, %s32_s22, [#allocation6], %s2976_s26, %s2976_s26, %s2977_s27  }
   0x7   :  { %s55_s29 = sshll.u32 %s2978_s28, 4  ;;  %s2979_s30 = smov 128   ;;  %s56_s29 = int_to_ptr.vmem [resolvable:$true] %s55_s29 }
   0x8   :  { %s2980_s6 = smov 8   ;;  %s19_s8 = sshll.u32 %s3177_s0, 4  ;;  %s20_s8 = int_to_ptr.hbm [resolvable:$true] %s19_s8 }
   0x9   :  { %61 = dma.hbm_to_vmem [thread:$0]  %s54_s25, 8192, %s56_s29, [#allocation9], %s2979_s30, %s2979_s30, %s2980_s6  }
   0xa   :  { %s2981_s9 = smov [#allocation2]   ;;  %s43_s12 = sshll.u32 %s3179_s2, 4  ;;  %s44_s12 = int_to_ptr.hbm [resolvable:$true] %s43_s12 }
   0xb   :  { %s21_s10 = sshll.u32 %s2981_s9, 4  ;;  %s2982_s13 = smov [#allocation7]   ;;  %s22_s10 = int_to_ptr.vmem [resolvable:$true] %s21_s10 }
   0xc   :  { %24 = dma.hbm_to_vmem [thread:$0]  %s20_s8, 256, %s22_s10, [#allocation3]  }
   0xd   :  { %s45_s14 = sshll.u32 %s2982_s13, 4  ;;  %s67_s17 = sshll.u32 %s3181_s4, 4  ;;  %s46_s14 = int_to_ptr.vmem [resolvable:$true] %s45_s14  ;;  %s68_s17 = int_to_ptr.hbm [resolvable:$true] %s67_s17 }
   0xe   :  { %48 = dma.hbm_to_vmem [thread:$0]  %s44_s12, 128, %s46_s14, [#allocation6]  }
   0xf   :  { %s2983_s0 = smov [#allocation10]  }
  0x10   :  { %s69_s18 = sshll.u32 %s2983_s0, 4  ;;  %s70_s18 = int_to_ptr.vmem [resolvable:$true] %s69_s18 }
  0x11   :  { %72 = dma.hbm_to_vmem [thread:$0]  %s68_s17, 64, %s70_s18, [#allocation9]  }
  0x12   :  { %2967 = dma.done.wait [#allocation3], 256  }
  0x13   :  { %2968 = vsyncadd [#allocation3], 4294967040 }
  0x14   :  { %2969 = dma.done.wait [#allocation6], 16512  }
  0x15   :  { %2970 = vsyncadd [#allocation6], 4294950784 }
  0x16   :  { %2971 = dma.done.wait [#allocation9], 8256  }
  0x17   :  { %2972 = vsyncadd [#allocation9], 4294959040  ;;  %v1952_v0 = vld [vmem:[#allocation5 + $0xe0] sm:$0xf]  ;;  %v2636_v1 = vld [vmem:[#allocation5 + $0xec] sm:$0xf0] }
  0x18   :  { %v2080_v2 = vld [vmem:[#allocation5 + $0x1e0] sm:$0xf]  ;;  %v1953_v3 = vor.u32 %v2636_v1, %v1952_v0  ;;  %v2668_v4 = vld [vmem:[#allocation5 + $0x1ec] sm:$0xf0]  ;;  %vm1208_vm12 = vcmask 1040384   ;;  %vm1210_vm13 = vcmask 1042434  }
  0x19   :  { %v2208_v5 = vld [vmem:[#allocation5 + $0x2e0] sm:$0xf]  ;;  %v2700_v6 = vld [vmem:[#allocation5 + $0x2ec] sm:$0xf0]  ;;  %v2081_v7 = vor.u32 %v2668_v4, %v2080_v2  ;;  %vm1212_vm15 = vcmask 1041408   ;;  %s2985_s2 = smov [#allocation11]  }
  0x1a   :  { %v2209_v8 = vor.u32 %v2700_v6, %v2208_v5  ;;  %v2336_v9 = vld [vmem:[#allocation5 + $0x3e0] sm:$0xf]  ;;  %v2732_v10 = vld [vmem:[#allocation5 + $0x3ec] sm:$0xf0]  ;;  %877 = vmatpush.bf16.msra.mxu0 %v1953_v3  ;;  %s1824_s4 = sshll.u32 %s2985_s2, 4  ;;  %s1826_s21 = sshll.u32 %s3182_s5, 4  ;;  %s1825_s4 = int_to_ptr.vmem [resolvable:$true] %s1824_s4  ;;  %s1827_s21 = int_to_ptr.hbm [resolvable:$true] %s1826_s21 }
  0x1b   :  { %v1936_v11 = vld [vmem:[#allocation5 + $0xc0] sm:$0xf]  ;;  %v2337_v12 = vor.u32 %v2732_v10, %v2336_v9  ;;  %v2632_v13 = vld [vmem:[#allocation5 + $0xcc] sm:$0xf0]  ;;  %890 = vmatpush.bf16.msra.mxu1 %v2081_v7 }
  0x1c   :  { %v2064_v14 = vld [vmem:[#allocation5 + $0x1c0] sm:$0xf]  ;;  %v2664_v15 = vld [vmem:[#allocation5 + $0x1cc] sm:$0xf0]  ;;  %903 = vmatpush.bf16.msra.mxu2 %v2209_v8  ;;  %v1937_v16 = vor.u32 %v2632_v13, %v1936_v11 }
  0x1d   :  { %v2065_v17 = vor.u32 %v2664_v15, %v2064_v14  ;;  %v2192_v18 = vld [vmem:[#allocation5 + $0x2c0] sm:$0xf]  ;;  %v2696_v19 = vld [vmem:[#allocation5 + $0x2cc] sm:$0xf0]  ;;  %916 = vmatpush.bf16.msra.mxu3 %v2337_v12 }
  0x1e   :  { %v2320_v20 = vld [vmem:[#allocation5 + $0x3c0] sm:$0xf]  ;;  %v2193_v21 = vor.u32 %v2696_v19, %v2192_v18  ;;  %v2728_v22 = vld [vmem:[#allocation5 + $0x3cc] sm:$0xf0]  ;;  %878 = vmatpush.bf16.msra.mxu0 %v1937_v16 }
  0x1f   :  { %v1920_v23 = vld [vmem:[#allocation5 + $0xa0] sm:$0xf]  ;;  %v2628_v24 = vld [vmem:[#allocation5 + $0xac] sm:$0xf0]  ;;  %v2321_v25 = vor.u32 %v2728_v22, %v2320_v20  ;;  %891 = vmatpush.bf16.msra.mxu1 %v2065_v17 }
  0x20   :  { %v2048_v26 = vld [vmem:[#allocation5 + $0x1a0] sm:$0xf]  ;;  %v2660_v27 = vld [vmem:[#allocation5 + $0x1ac] sm:$0xf0]  ;;  %v1921_v29 = vor.u32 %v2628_v24, %v1920_v23  ;;  %904 = vmatpush.bf16.msra.mxu2 %v2193_v21 }
  0x21   :  { %v2176_v28 = vld [vmem:[#allocation5 + $0x2a0] sm:$0xf]  ;;  %v2692_v30 = vld [vmem:[#allocation5 + $0x2ac] sm:$0xf0]  ;;  %v2049_v33 = vor.u32 %v2660_v27, %v2048_v26  ;;  %917 = vmatpush.bf16.msra.mxu3 %v2321_v25  ;;  %v94_v25 = vld [vmem:[#allocation2 + $0x8] sm:$0xff] }
  0x22   :  { %v2304_v31 = vld [vmem:[#allocation5 + $0x3a0] sm:$0xf]  ;;  %v2724_v32 = vld [vmem:[#allocation5 + $0x3ac] sm:$0xf0]  ;;  %v2177_v34 = vor.u32 %v2692_v30, %v2176_v28  ;;  %879 = vmatpush.bf16.msra.mxu0 %v1921_v29  ;;  %v2634_v29 = vld [vmem:[#allocation5 + $0xe4] sm:$0xf] }
  0x23   :  { %v1904_v35 = vld [vmem:[#allocation5 + $0x80] sm:$0xf]  ;;  %v2624_v36 = vld [vmem:[#allocation5 + $0x8c] sm:$0xf0]  ;;  %v2305_v38 = vor.u32 %v2724_v32, %v2304_v31  ;;  %892 = vmatpush.bf16.msra.mxu1 %v2049_v33  ;;  %v1954_v30 = vld [vmem:[#allocation5 + $0xf0] sm:$0xf0] }
  0x24   :  { %v2032_v37 = vld [vmem:[#allocation5 + $0x180] sm:$0xf]  ;;  %v2656_v39 = vld [vmem:[#allocation5 + $0x18c] sm:$0xf0]  ;;  %v1905_v44 = vor.u32 %v2624_v36, %v1904_v35  ;;  %905 = vmatpush.bf16.msra.mxu2 %v2177_v34  ;;  %v2666_v31 = vld [vmem:[#allocation5 + $0x1e4] sm:$0xf]  ;;  %v227_v36 = vunpack.c.l.b16 %v94_v25 }
  0x25   :  { %v2160_v40 = vld [vmem:[#allocation5 + $0x280] sm:$0xf]  ;;  %v2688_v41 = vld [vmem:[#allocation5 + $0x28c] sm:$0xf0]  ;;  %v2033_v45 = vor.u32 %v2656_v39, %v2032_v37  ;;  %918 = vmatpush.bf16.msra.mxu3 %v2305_v38  ;;  %v2082_v32 = vld [vmem:[#allocation5 + $0x1f0] sm:$0xf0] }
  0x26   :  { %v2288_v42 = vld [vmem:[#allocation5 + $0x380] sm:$0xf]  ;;  %v2720_v43 = vld [vmem:[#allocation5 + $0x38c] sm:$0xf0]  ;;  %v2161_v46 = vor.u32 %v2688_v41, %v2160_v40  ;;  %880 = vmatpush.bf16.msra.mxu0 %v1905_v44  ;;  %v2698_v34 = vld [vmem:[#allocation5 + $0x2e4] sm:$0xf] }
  0x27   :  { %v1888_v47 = vld [vmem:[#allocation5 + $0x60] sm:$0xf]  ;;  %v2620_v48 = vld [vmem:[#allocation5 + $0x6c] sm:$0xf0]  ;;  %v2289_v50 = vor.u32 %v2720_v43, %v2288_v42  ;;  %893 = vmatpush.bf16.msra.mxu1 %v2033_v45  ;;  %v2210_v35 = vld [vmem:[#allocation5 + $0x2f0] sm:$0xf0]  ;;  %v228_v42 = vunpack.c.h.b16 %v94_v25  ;;  %v1957_v45 = vor.u32 %v2634_v29, %v1954_v30 }
  0x28   :  { %v2016_v49 = vld [vmem:[#allocation5 + $0x160] sm:$0xf]  ;;  %v2652_v51 = vld [vmem:[#allocation5 + $0x16c] sm:$0xf0]  ;;  %v1889_v56 = vor.u32 %v2620_v48, %v1888_v47  ;;  %906 = vmatpush.bf16.msra.mxu2 %v2161_v46  ;;  %v2730_v40 = vld [vmem:[#allocation5 + $0x3e4] sm:$0xf]  ;;  %v2085_v47 = vor.u32 %v2666_v31, %v2082_v32  ;;  %v2213_v48 = vor.u32 %v2698_v34, %v2210_v35 }
  0x29   :  { %v2144_v52 = vld [vmem:[#allocation5 + $0x260] sm:$0xf]  ;;  %v2684_v53 = vld [vmem:[#allocation5 + $0x26c] sm:$0xf0]  ;;  %v2017_v57 = vor.u32 %v2652_v51, %v2016_v49  ;;  %919 = vmatpush.bf16.msra.mxu3 %v2289_v50  ;;  %v2338_v41 = vld [vmem:[#allocation5 + $0x3f0] sm:$0xf0] }
  0x2a   :  { %v2272_v54 = vld [vmem:[#allocation5 + $0x360] sm:$0xf]  ;;  %v2716_v55 = vld [vmem:[#allocation5 + $0x36c] sm:$0xf0]  ;;  %v2145_v58 = vor.u32 %v2684_v53, %v2144_v52  ;;  %881 = vmatpush.bf16.msra.mxu0 %v1889_v56  ;;  %v2630_v49 = vld [vmem:[#allocation5 + $0xc4] sm:$0xf]  ;;  %v2341_v52 = vor.u32 %v2730_v40, %v2338_v41  ;;  %v3031_v53 = vpack.c.b16 %v227_v36, %v227_v36 }
  0x2b   :  { %v1872_v59 = vld [vmem:[#allocation5 + $0x40] sm:$0xf]  ;;  %v2616_v60 = vld [vmem:[#allocation5 + $0x4c] sm:$0xf0]  ;;  %v2273_v62 = vor.u32 %v2716_v55, %v2272_v54  ;;  %894 = vmatpush.bf16.msra.mxu1 %v2017_v57  ;;  %v1938_v50 = vld [vmem:[#allocation5 + $0xd0] sm:$0xf0]  ;;  %v3033_v57 = vpack.c.b16 %v228_v42, %v228_v42 }
  0x2c   :  { %v2000_v61 = vld [vmem:[#allocation5 + $0x140] sm:$0xf]  ;;  %v2648_v63 = vld [vmem:[#allocation5 + $0x14c] sm:$0xf0]  ;;  %v1873_v4 = vor.u32 %v2616_v60, %v1872_v59  ;;  %907 = vmatpush.bf16.msra.mxu2 %v2145_v58  ;;  %v2662_v51 = vld [vmem:[#allocation5 + $0x1c4] sm:$0xf] }
  0x2d   :  { %v2128_v0 = vld [vmem:[#allocation5 + $0x240] sm:$0xf]  ;;  %v2680_v1 = vld [vmem:[#allocation5 + $0x24c] sm:$0xf0]  ;;  %v2001_v5 = vor.u32 %v2648_v63, %v2000_v61  ;;  %920 = vmatpush.bf16.msra.mxu3 %v2273_v62  ;;  %v2066_v54 = vld [vmem:[#allocation5 + $0x1d0] sm:$0xf0]  ;;  %v1941_v61 = vor.u32 %v2630_v49, %v1938_v50 }
  0x2e   :  { %v2256_v2 = vld [vmem:[#allocation5 + $0x340] sm:$0xf]  ;;  %v2712_v3 = vld [vmem:[#allocation5 + $0x34c] sm:$0xf0]  ;;  %v2129_v6 = vor.u32 %v2680_v1, %v2128_v0  ;;  %882 = vmatpush.bf16.msra.mxu0 %v1873_v4  ;;  %v2694_v55 = vld [vmem:[#allocation5 + $0x2c4] sm:$0xf]  ;;  %v2069_v63 = vor.u32 %v2662_v51, %v2066_v54 }
  0x2f   :  { %v1856_v7 = vld [vmem:[#allocation5 + $0x20] sm:$0xf]  ;;  %v2612_v8 = vld [vmem:[#allocation5 + $0x2c] sm:$0xf0]  ;;  %v2257_v10 = vor.u32 %v2712_v3, %v2256_v2  ;;  %895 = vmatpush.bf16.msra.mxu1 %v2001_v5  ;;  %v2194_v56 = vld [vmem:[#allocation5 + $0x2d0] sm:$0xf0] }
  0x30   :  { %v1984_v9 = vld [vmem:[#allocation5 + $0x120] sm:$0xf]  ;;  %v2644_v11 = vld [vmem:[#allocation5 + $0x12c] sm:$0xf0]  ;;  %v1857_v17 = vor.u32 %v2612_v8, %v1856_v7  ;;  %908 = vmatpush.bf16.msra.mxu2 %v2129_v6  ;;  %v2726_v58 = vld [vmem:[#allocation5 + $0x3c4] sm:$0xf]  ;;  %v2197_v0 = vor.u32 %v2694_v55, %v2194_v56 }
  0x31   :  { %v2112_v12 = vld [vmem:[#allocation5 + $0x220] sm:$0xf]  ;;  %v2676_v13 = vld [vmem:[#allocation5 + $0x22c] sm:$0xf0]  ;;  %v1985_v21 = vor.u32 %v2644_v11, %v1984_v9  ;;  %921 = vmatpush.bf16.msra.mxu3 %v2257_v10  ;;  %v2322_v59 = vld [vmem:[#allocation5 + $0x3d0] sm:$0xf0] }
  0x32   :  { %v2240_v14 = vld [vmem:[#allocation5 + $0x320] sm:$0xf]  ;;  %v2708_v15 = vld [vmem:[#allocation5 + $0x32c] sm:$0xf0]  ;;  %v2113_v22 = vor.u32 %v2676_v13, %v2112_v12  ;;  %883 = vmatpush.bf16.msra.mxu0 %v1857_v17  ;;  %v2626_v1 = vld [vmem:[#allocation5 + $0xa4] sm:$0xf]  ;;  %v2325_v4 = vor.u32 %v2726_v58, %v2322_v59 }
  0x33   :  { %v1840_v16 = vld [vmem:[#allocation5] sm:$0xf]  ;;  %v2608_v18 = vld [vmem:[#allocation5 + $0xc] sm:$0xf0]  ;;  %v2241_v26 = vor.u32 %v2708_v15, %v2240_v14  ;;  %896 = vmatpush.bf16.msra.mxu1 %v1985_v21  ;;  %v1922_v2 = vld [vmem:[#allocation5 + $0xb0] sm:$0xf0] }
  0x34   :  { %v1968_v19 = vld [vmem:[#allocation5 + $0x100] sm:$0xf]  ;;  %v2640_v20 = vld [vmem:[#allocation5 + $0x10c] sm:$0xf0]  ;;  %v1841_v33 = vor.u32 %v2608_v18, %v1840_v16  ;;  %909 = vmatpush.bf16.msra.mxu2 %v2113_v22  ;;  %v2658_v3 = vld [vmem:[#allocation5 + $0x1a4] sm:$0xf]  ;;  %v1925_v10 = vor.u32 %v2626_v1, %v1922_v2 }
  0x35   :  { %v2096_v23 = vld [vmem:[#allocation5 + $0x200] sm:$0xf]  ;;  %v2672_v24 = vld [vmem:[#allocation5 + $0x20c] sm:$0xf0]  ;;  %v1969_v38 = vor.u32 %v2640_v20, %v1968_v19  ;;  %922 = vmatpush.bf16.msra.mxu3 %v2241_v26  ;;  %v2050_v5 = vld [vmem:[#allocation5 + $0x1b0] sm:$0xf0] }
  0x36   :  { %v2224_v27 = vld [vmem:[#allocation5 + $0x300] sm:$0xf]  ;;  %v2704_v28 = vld [vmem:[#allocation5 + $0x30c] sm:$0xf0]  ;;  %v2097_v39 = vor.u32 %v2672_v24, %v2096_v23  ;;  %884 = vmatpush.bf16.msra.mxu0 %v1841_v33  ;;  %v2690_v6 = vld [vmem:[#allocation5 + $0x2a4] sm:$0xf]  ;;  %v2053_v11 = vor.u32 %v2658_v3, %v2050_v5 }
  0x37   :  { %v93_v37 = vld [vmem:[#allocation2] sm:$0xff]  ;;  %v2225_v44 = vor.u32 %v2704_v28, %v2224_v27  ;;  %897 = vmatpush.bf16.msra.mxu1 %v1969_v38  ;;  %v2722_v8 = vld [vmem:[#allocation5 + $0x3a4] sm:$0xf] }
  0x38   :  { %v225_v43 = vunpack.c.l.b16 %v93_v37  ;;  %v226_v46 = vunpack.c.h.b16 %v93_v37  ;;  %910 = vmatpush.bf16.msra.mxu2 %v2097_v39  ;;  %v2178_v7 = vld [vmem:[#allocation5 + $0x2b0] sm:$0xf0]  ;;  %v2622_v13 = vld [vmem:[#allocation5 + $0x84] sm:$0xf] }
  0x39   :  { %923 = vmatpush.bf16.msra.mxu3 %v2225_v44  ;;  %v2306_v9 = vld [vmem:[#allocation5 + $0x3b0] sm:$0xf0]  ;;  %v2181_v12 = vor.u32 %v2690_v6, %v2178_v7  ;;  %v2654_v15 = vld [vmem:[#allocation5 + $0x184] sm:$0xf] }
  0x3a   :  { %v3035_v60 = vpack.c.b16 %v225_v43, %v225_v43  ;;  %929 = vmatpush.bf16.msrb.mxu0 %v1957_v45  ;;  %v3037_v62 = vpack.c.b16 %v226_v46, %v226_v46  ;;  %v1906_v14 = vld [vmem:[#allocation5 + $0x90] sm:$0xf0]  ;;  %v2309_v16 = vor.u32 %v2722_v8, %v2306_v9  ;;  %v2686_v18 = vld [vmem:[#allocation5 + $0x284] sm:$0xf] }
  0x3b   :  { %942 = vmatpush.bf16.msrb.mxu1 %v2085_v47  ;;  %911 = vmatmul.bf16.vlgmr.msra.gmra.mxu2 %v3031_v53  ;;  %v2034_v17 = vld [vmem:[#allocation5 + $0x190] sm:$0xf0]  ;;  %v2718_v20 = vld [vmem:[#allocation5 + $0x384] sm:$0xf]  ;;  %v1909_v22 = vor.u32 %v2622_v13, %v1906_v14  ;;  %v2669_v14 = vld [vmem:[#allocation5 + $0x1f4] sm:$0xf0] }
  0x3c   :  { %955 = vmatpush.bf16.msrb.mxu2 %v2213_v48  ;;  %924 = vmatmul.bf16.vlgmr.msra.gmra.mxu3 %v3033_v57  ;;  %v2162_v19 = vld [vmem:[#allocation5 + $0x290] sm:$0xf0]  ;;  %v2037_v23 = vor.u32 %v2654_v15, %v2034_v17  ;;  %v2618_v25 = vld [vmem:[#allocation5 + $0x64] sm:$0xf]  ;;  %v2216_v15 = vld [vmem:[#allocation5 + $0x2e8] sm:$0xf] }
  0x3d   :  { %968 = vmatpush.bf16.msrb.mxu3 %v2341_v52  ;;  %885 = vmatmul.bf16.vlgmr.msra.gmra.mxu0 %v3035_v60  ;;  %v2290_v21 = vld [vmem:[#allocation5 + $0x390] sm:$0xf0]  ;;  %v2165_v24 = vor.u32 %v2686_v18, %v2162_v19  ;;  %v2650_v27 = vld [vmem:[#allocation5 + $0x164] sm:$0xf]  ;;  %v2344_v19 = vld [vmem:[#allocation5 + $0x3e8] sm:$0xf] }
  0x3e   :  { %930 = vmatpush.bf16.msrb.mxu0 %v1941_v61  ;;  %898 = vmatmul.bf16.vlgmr.msra.gmra.mxu1 %v3037_v62  ;;  %v1890_v26 = vld [vmem:[#allocation5 + $0x70] sm:$0xf0]  ;;  %v2293_v28 = vor.u32 %v2718_v20, %v2290_v21  ;;  %v2682_v30 = vld [vmem:[#allocation5 + $0x264] sm:$0xf]  ;;  %v2733_v20 = vld [vmem:[#allocation5 + $0x3f4] sm:$0xf0] }
  0x3f   :  { %943 = vmatpush.bf16.msrb.mxu1 %v2069_v63  ;;  %v2018_v29 = vld [vmem:[#allocation5 + $0x170] sm:$0xf0]  ;;  %v2714_v32 = vld [vmem:[#allocation5 + $0x364] sm:$0xf]  ;;  %v1893_v34 = vor.u32 %v2618_v25, %v1890_v26  ;;  %v1944_v25 = vld [vmem:[#allocation5 + $0xc8] sm:$0xf] }
  0x40   :  { %956 = vmatpush.bf16.msrb.mxu2 %v2197_v0  ;;  %v2146_v31 = vld [vmem:[#allocation5 + $0x270] sm:$0xf0]  ;;  %v2021_v35 = vor.u32 %v2650_v27, %v2018_v29  ;;  %v2614_v37 = vld [vmem:[#allocation5 + $0x44] sm:$0xf]  ;;  %v2633_v26 = vld [vmem:[#allocation5 + $0xd4] sm:$0xf0] }
  0x41   :  { %969 = vmatpush.bf16.msrb.mxu3 %v2325_v4  ;;  %v2274_v33 = vld [vmem:[#allocation5 + $0x370] sm:$0xf0]  ;;  %v2149_v36 = vor.u32 %v2682_v30, %v2146_v31  ;;  %v2646_v39 = vld [vmem:[#allocation5 + $0x144] sm:$0xf]  ;;  %v2072_v27 = vld [vmem:[#allocation5 + $0x1c8] sm:$0xf] }
  0x42   :  { %931 = vmatpush.bf16.msrb.mxu0 %v1925_v10  ;;  %v1874_v38 = vld [vmem:[#allocation5 + $0x50] sm:$0xf0]  ;;  %v2277_v40 = vor.u32 %v2714_v32, %v2274_v33  ;;  %v2678_v42 = vld [vmem:[#allocation5 + $0x244] sm:$0xf]  ;;  %v1960_v10 = vld [vmem:[#allocation5 + $0xe8] sm:$0xf] }
  0x43   :  { %944 = vmatpush.bf16.msrb.mxu1 %v2053_v11  ;;  %v2002_v41 = vld [vmem:[#allocation5 + $0x150] sm:$0xf0]  ;;  %v2710_v44 = vld [vmem:[#allocation5 + $0x344] sm:$0xf]  ;;  %v1877_v46 = vor.u32 %v2614_v37, %v1874_v38  ;;  %v2637_v11 = vld [vmem:[#allocation5 + $0xf4] sm:$0xf0] }
  0x44   :  { %957 = vmatpush.bf16.msrb.mxu2 %v2181_v12  ;;  %v2130_v43 = vld [vmem:[#allocation5 + $0x250] sm:$0xf0]  ;;  %v2005_v47 = vor.u32 %v2646_v39, %v2002_v41  ;;  %v2610_v49 = vld [vmem:[#allocation5 + $0x24] sm:$0xf]  ;;  %v2088_v12 = vld [vmem:[#allocation5 + $0x1e8] sm:$0xf] }
  0x45   :  { %970 = vmatpush.bf16.msrb.mxu3 %v2309_v16  ;;  %v2258_v45 = vld [vmem:[#allocation5 + $0x350] sm:$0xf0]  ;;  %v2133_v48 = vor.u32 %v2678_v42, %v2130_v43  ;;  %v2642_v51 = vld [vmem:[#allocation5 + $0x124] sm:$0xf]  ;;  %v2701_v16 = vld [vmem:[#allocation5 + $0x2f4] sm:$0xf0] }
  0x46   :  { %932 = vmatpush.bf16.msrb.mxu0 %v1909_v22  ;;  %v1858_v50 = vld [vmem:[#allocation5 + $0x30] sm:$0xf0]  ;;  %v2261_v52 = vor.u32 %v2710_v44, %v2258_v45  ;;  %v2674_v55 = vld [vmem:[#allocation5 + $0x224] sm:$0xf]  ;;  %v1961_v22 = vor.u32 %v2637_v11, %v1960_v10  ;;  %v2665_v29 = vld [vmem:[#allocation5 + $0x1d4] sm:$0xf0] }
  0x47   :  { %945 = vmatpush.bf16.msrb.mxu1 %v2037_v23  ;;  %v1986_v54 = vld [vmem:[#allocation5 + $0x130] sm:$0xf0]  ;;  %v2706_v58 = vld [vmem:[#allocation5 + $0x324] sm:$0xf]  ;;  %v1861_v61 = vor.u32 %v2610_v49, %v1858_v50  ;;  %v2089_v23 = vor.u32 %v2669_v14, %v2088_v12  ;;  %v2200_v30 = vld [vmem:[#allocation5 + $0x2c8] sm:$0xf] }
  0x48   :  { %958 = vmatpush.bf16.msrb.mxu2 %v2165_v24  ;;  %v2114_v56 = vld [vmem:[#allocation5 + $0x230] sm:$0xf0]  ;;  %v2606_v63 = vld [vmem:[#allocation5 + $0x4] sm:$0xf]  ;;  %v1989_v1 = vor.u32 %v2642_v51, %v1986_v54  ;;  %v2217_v24 = vor.u32 %v2701_v16, %v2216_v15  ;;  %v2697_v31 = vld [vmem:[#allocation5 + $0x2d4] sm:$0xf0] }
  0x49   :  { %971 = vmatpush.bf16.msrb.mxu3 %v2293_v28  ;;  %v2242_v59 = vld [vmem:[#allocation5 + $0x330] sm:$0xf0]  ;;  %v2117_v2 = vor.u32 %v2674_v55, %v2114_v56  ;;  %v2638_v3 = vld [vmem:[#allocation5 + $0x104] sm:$0xf]  ;;  %v2345_v28 = vor.u32 %v2733_v20, %v2344_v19  ;;  %v2328_v32 = vld [vmem:[#allocation5 + $0x3c8] sm:$0xf] }
  0x4a   :  { %933 = vmatpush.bf16.msrb.mxu0 %v1893_v34  ;;  %v1842_v0 = vld [vmem:[#allocation5 + $0x10] sm:$0xf0]  ;;  %v2670_v5 = vld [vmem:[#allocation5 + $0x204] sm:$0xf]  ;;  %v2245_v6 = vor.u32 %v2706_v58, %v2242_v59  ;;  %v2729_v33 = vld [vmem:[#allocation5 + $0x3d4] sm:$0xf0]  ;;  %v1945_v34 = vor.u32 %v2633_v26, %v1944_v25 }
  0x4b   :  { %946 = vmatpush.bf16.msrb.mxu1 %v2021_v35  ;;  %v1970_v4 = vld [vmem:[#allocation5 + $0x110] sm:$0xf0]  ;;  %v2702_v8 = vld [vmem:[#allocation5 + $0x304] sm:$0xf]  ;;  %v1845_v13 = vor.u32 %v2606_v63, %v1842_v0  ;;  %v2073_v35 = vor.u32 %v2665_v29, %v2072_v27  ;;  %v1928_v37 = vld [vmem:[#allocation5 + $0xa8] sm:$0xf] }
  0x4c   :  { %959 = vmatpush.bf16.msrb.mxu2 %v2149_v36  ;;  %v2098_v7 = vld [vmem:[#allocation5 + $0x210] sm:$0xf0]  ;;  %v1973_v17 = vor.u32 %v2638_v3, %v1970_v4  ;;  %v2201_v36 = vor.u32 %v2697_v31, %v2200_v30  ;;  %v2629_v38 = vld [vmem:[#allocation5 + $0xb4] sm:$0xf0]  ;;  %v2056_v39 = vld [vmem:[#allocation5 + $0x1a8] sm:$0xf] }
  0x4d   :  { %972 = vmatpush.bf16.msrb.mxu3 %v2277_v40  ;;  %v2226_v9 = vld [vmem:[#allocation5 + $0x310] sm:$0xf0]  ;;  %v2101_v18 = vor.u32 %v2670_v5, %v2098_v7  ;;  %v2329_v40 = vor.u32 %v2729_v33, %v2328_v32  ;;  %v2661_v41 = vld [vmem:[#allocation5 + $0x1b4] sm:$0xf0]  ;;  %v2184_v42 = vld [vmem:[#allocation5 + $0x2a8] sm:$0xf] }
  0x4e   :  { %934 = vmatpush.bf16.msrb.mxu0 %v1877_v46  ;;  %v2229_v21 = vor.u32 %v2702_v8, %v2226_v9  ;;  %v2693_v43 = vld [vmem:[#allocation5 + $0x2b4] sm:$0xf0]  ;;  %v2312_v44 = vld [vmem:[#allocation5 + $0x3a8] sm:$0xf]  ;;  %v1929_v46 = vor.u32 %v2629_v38, %v1928_v37 }
  0x4f   :  { %947 = vmatpush.bf16.msrb.mxu1 %v2005_v47  ;;  %v2725_v45 = vld [vmem:[#allocation5 + $0x3b4] sm:$0xf0]  ;;  %v2057_v47 = vor.u32 %v2661_v41, %v2056_v39  ;;  %v1912_v49 = vld [vmem:[#allocation5 + $0x88] sm:$0xf] }
  0x50   :  { %960 = vmatpush.bf16.msrb.mxu2 %v2133_v48  ;;  %v2185_v48 = vor.u32 %v2693_v43, %v2184_v42  ;;  %v2625_v50 = vld [vmem:[#allocation5 + $0x94] sm:$0xf0]  ;;  %v2040_v51 = vld [vmem:[#allocation5 + $0x188] sm:$0xf] }
  0x51   :  { %973 = vmatpush.bf16.msrb.mxu3 %v2261_v52  ;;  %v2313_v52 = vor.u32 %v2725_v45, %v2312_v44  ;;  %v2657_v54 = vld [vmem:[#allocation5 + $0x194] sm:$0xf0]  ;;  %v2168_v55 = vld [vmem:[#allocation5 + $0x288] sm:$0xf] }
  0x52   :  { %935 = vmatpush.bf16.msrb.mxu0 %v1861_v61  ;;  %v2689_v56 = vld [vmem:[#allocation5 + $0x294] sm:$0xf0]  ;;  %v2296_v58 = vld [vmem:[#allocation5 + $0x388] sm:$0xf]  ;;  %v1913_v61 = vor.u32 %v2625_v50, %v1912_v49  ;;  %v2041_v63 = vor.u32 %v2657_v54, %v2040_v51  ;;  %v2090_v50 = vld [vmem:[#allocation5 + $0x1f8] sm:$0xf0] }
  0x53   :  { %948 = vmatpush.bf16.msrb.mxu1 %v1989_v1  ;;  %v2721_v59 = vld [vmem:[#allocation5 + $0x394] sm:$0xf0]  ;;  %v2169_v0 = vor.u32 %v2689_v56, %v2168_v55  ;;  %v1896_v1 = vld [vmem:[#allocation5 + $0x68] sm:$0xf]  ;;  %v2699_v51 = vld [vmem:[#allocation5 + $0x2ec] sm:$0xf] }
  0x54   :  { %961 = vmatpush.bf16.msrb.mxu2 %v2117_v2  ;;  %v2621_v2 = vld [vmem:[#allocation5 + $0x74] sm:$0xf0]  ;;  %v2024_v3 = vld [vmem:[#allocation5 + $0x168] sm:$0xf]  ;;  %v2297_v4 = vor.u32 %v2721_v59, %v2296_v58  ;;  %v2731_v56 = vld [vmem:[#allocation5 + $0x3ec] sm:$0xf] }
  0x55   :  { %974 = vmatpush.bf16.msrb.mxu3 %v2245_v6  ;;  %v2653_v5 = vld [vmem:[#allocation5 + $0x174] sm:$0xf0]  ;;  %v2152_v6 = vld [vmem:[#allocation5 + $0x268] sm:$0xf]  ;;  %v1897_v10 = vor.u32 %v2621_v2, %v1896_v1  ;;  %v2346_v58 = vld [vmem:[#allocation5 + $0x3f8] sm:$0xf0] }
  0x56   :  { %936 = vmatpush.bf16.msrb.mxu0 %v1845_v13  ;;  %v2685_v7 = vld [vmem:[#allocation5 + $0x274] sm:$0xf0]  ;;  %v2280_v8 = vld [vmem:[#allocation5 + $0x368] sm:$0xf]  ;;  %v2025_v11 = vor.u32 %v2653_v5, %v2024_v3  ;;  %v2631_v1 = vld [vmem:[#allocation5 + $0xcc] sm:$0xf] }
  0x57   :  { %949 = vmatpush.bf16.msrb.mxu1 %v1973_v17  ;;  %v2717_v9 = vld [vmem:[#allocation5 + $0x374] sm:$0xf0]  ;;  %v2153_v12 = vor.u32 %v2685_v7, %v2152_v6  ;;  %v1880_v13 = vld [vmem:[#allocation5 + $0x48] sm:$0xf]  ;;  %v1946_v2 = vld [vmem:[#allocation5 + $0xd8] sm:$0xf0] }
  0x58   :  { %962 = vmatpush.bf16.msrb.mxu2 %v2101_v18  ;;  %v2617_v14 = vld [vmem:[#allocation5 + $0x54] sm:$0xf0]  ;;  %v2008_v15 = vld [vmem:[#allocation5 + $0x148] sm:$0xf]  ;;  %v2281_v16 = vor.u32 %v2717_v9, %v2280_v8  ;;  %v2663_v3 = vld [vmem:[#allocation5 + $0x1cc] sm:$0xf] }
  0x59   :  { %975 = vmatpush.bf16.msrb.mxu3 %v2229_v21  ;;  %937 = vmatmul.bf16.vlgmr.msrb.gmra.mxu0 %v3035_v60  ;;  %v2649_v17 = vld [vmem:[#allocation5 + $0x154] sm:$0xf0]  ;;  %v2136_v18 = vld [vmem:[#allocation5 + $0x248] sm:$0xf]  ;;  %v2074_v5 = vld [vmem:[#allocation5 + $0x1d8] sm:$0xf0] }
  0x5a   :  { %981 = vmatpush.bf16.msra.mxu0 %v1961_v22  ;;  %950 = vmatmul.bf16.vlgmr.msrb.gmra.mxu1 %v3037_v62  ;;  %v2681_v19 = vld [vmem:[#allocation5 + $0x254] sm:$0xf0]  ;;  %v2264_v20 = vld [vmem:[#allocation5 + $0x348] sm:$0xf]  ;;  %v1881_v22 = vor.u32 %v2617_v14, %v1880_v13  ;;  %v2695_v6 = vld [vmem:[#allocation5 + $0x2cc] sm:$0xf] }
  0x5b   :  { %994 = vmatpush.bf16.msra.mxu1 %v2089_v23  ;;  %963 = vmatmul.bf16.vlgmr.msrb.gmra.mxu2 %v3031_v53  ;;  %v2713_v21 = vld [vmem:[#allocation5 + $0x354] sm:$0xf0]  ;;  %v2009_v23 = vor.u32 %v2649_v17, %v2008_v15  ;;  %v1864_v25 = vld [vmem:[#allocation5 + $0x28] sm:$0xf]  ;;  %v2202_v7 = vld [vmem:[#allocation5 + $0x2d8] sm:$0xf0] }
  0x5c   :  { %1007 = vmatpush.bf16.msra.mxu2 %v2217_v24  ;;  %976 = vmatmul.bf16.vlgmr.msrb.gmra.mxu3 %v3033_v57  ;;  %v2137_v24 = vor.u32 %v2681_v19, %v2136_v18  ;;  %v2613_v26 = vld [vmem:[#allocation5 + $0x34] sm:$0xf0]  ;;  %v1992_v27 = vld [vmem:[#allocation5 + $0x128] sm:$0xf]  ;;  %v2727_v8 = vld [vmem:[#allocation5 + $0x3cc] sm:$0xf] }
  0x5d   :  { %1020 = vmatpush.bf16.msra.mxu3 %v2345_v28  ;;  %v2265_v28 = vor.u32 %v2713_v21, %v2264_v20  ;;  %v2645_v29 = vld [vmem:[#allocation5 + $0x134] sm:$0xf0]  ;;  %v2120_v30 = vld [vmem:[#allocation5 + $0x228] sm:$0xf]  ;;  %v2330_v9 = vld [vmem:[#allocation5 + $0x3d8] sm:$0xf0] }
  0x5e   :  { %982 = vmatpush.bf16.msra.mxu0 %v1945_v34  ;;  %v2677_v31 = vld [vmem:[#allocation5 + $0x234] sm:$0xf0]  ;;  %v2248_v32 = vld [vmem:[#allocation5 + $0x328] sm:$0xf]  ;;  %v1865_v34 = vor.u32 %v2613_v26, %v1864_v25  ;;  %v1993_v37 = vor.u32 %v2645_v29, %v1992_v27  ;;  %v2627_v13 = vld [vmem:[#allocation5 + $0xac] sm:$0xf] }
  0x5f   :  { %995 = vmatpush.bf16.msra.mxu1 %v2073_v35  ;;  %v2709_v33 = vld [vmem:[#allocation5 + $0x334] sm:$0xf0]  ;;  %v1848_v35 = vld [vmem:[#allocation5 + $0x8] sm:$0xf]  ;;  %v2121_v38 = vor.u32 %v2677_v31, %v2120_v30  ;;  %v1930_v14 = vld [vmem:[#allocation5 + $0xb8] sm:$0xf0] }
  0x60   :  { %1008 = vmatpush.bf16.msra.mxu2 %v2201_v36  ;;  %v2609_v36 = vld [vmem:[#allocation5 + $0x14] sm:$0xf0]  ;;  %v1976_v39 = vld [vmem:[#allocation5 + $0x108] sm:$0xf]  ;;  %v2249_v42 = vor.u32 %v2709_v33, %v2248_v32  ;;  %v2659_v15 = vld [vmem:[#allocation5 + $0x1ac] sm:$0xf] }
  0x61   :  { %1021 = vmatpush.bf16.msra.mxu3 %v2329_v40  ;;  %v2641_v40 = vld [vmem:[#allocation5 + $0x114] sm:$0xf0]  ;;  %v2104_v41 = vld [vmem:[#allocation5 + $0x208] sm:$0xf]  ;;  %v1849_v49 = vor.u32 %v2609_v36, %v1848_v35  ;;  %v2058_v17 = vld [vmem:[#allocation5 + $0x1b8] sm:$0xf0] }
  0x62   :  { %983 = vmatpush.bf16.msra.mxu0 %v1929_v46  ;;  %v2673_v43 = vld [vmem:[#allocation5 + $0x214] sm:$0xf0]  ;;  %v2232_v44 = vld [vmem:[#allocation5 + $0x308] sm:$0xf]  ;;  %v2635_v46 = vld [vmem:[#allocation5 + $0xec] sm:$0xf]  ;;  %v1977_v54 = vor.u32 %v2641_v40, %v1976_v39 }
  0x63   :  { %996 = vmatpush.bf16.msra.mxu1 %v2057_v47  ;;  %v2705_v45 = vld [vmem:[#allocation5 + $0x314] sm:$0xf0]  ;;  %v1962_v47 = vld [vmem:[#allocation5 + $0xf8] sm:$0xf0]  ;;  %v2105_v55 = vor.u32 %v2673_v43, %v2104_v41  ;;  %v2691_v18 = vld [vmem:[#allocation5 + $0x2ac] sm:$0xf] }
  0x64   :  { %1009 = vmatpush.bf16.msra.mxu2 %v2185_v48  ;;  %v2667_v48 = vld [vmem:[#allocation5 + $0x1ec] sm:$0xf]  ;;  %v2233_v59 = vor.u32 %v2705_v45, %v2232_v44  ;;  %v2186_v19 = vld [vmem:[#allocation5 + $0x2b8] sm:$0xf0] }
  0x65   :  { %1022 = vmatpush.bf16.msra.mxu3 %v2313_v52  ;;  %v2218_v52 = vld [vmem:[#allocation5 + $0x2f8] sm:$0xf0]  ;;  %v2723_v20 = vld [vmem:[#allocation5 + $0x3ac] sm:$0xf] }
  0x66   :  { %984 = vmatpush.bf16.msra.mxu0 %v1913_v61  ;;  %v1965_v61 = vor.u32 %v2635_v46, %v1962_v47  ;;  %v2314_v21 = vld [vmem:[#allocation5 + $0x3b8] sm:$0xf0]  ;;  %v2623_v25 = vld [vmem:[#allocation5 + $0x8c] sm:$0xf] }
  0x67   :  { %997 = vmatpush.bf16.msra.mxu1 %v2041_v63  ;;  %v2093_v63 = vor.u32 %v2667_v48, %v2090_v50  ;;  %v1914_v26 = vld [vmem:[#allocation5 + $0x98] sm:$0xf0]  ;;  %v2655_v27 = vld [vmem:[#allocation5 + $0x18c] sm:$0xf] }
  0x68   :  { %1010 = vmatpush.bf16.msra.mxu2 %v2169_v0  ;;  %v2221_v0 = vor.u32 %v2699_v51, %v2218_v52  ;;  %v2042_v29 = vld [vmem:[#allocation5 + $0x198] sm:$0xf0]  ;;  %v2687_v30 = vld [vmem:[#allocation5 + $0x28c] sm:$0xf] }
  0x69   :  { %1023 = vmatpush.bf16.msra.mxu3 %v2297_v4  ;;  %v2349_v4 = vor.u32 %v2731_v56, %v2346_v58  ;;  %v2170_v31 = vld [vmem:[#allocation5 + $0x298] sm:$0xf0]  ;;  %v2719_v32 = vld [vmem:[#allocation5 + $0x38c] sm:$0xf]  ;;  %v2045_v35 = vor.u32 %v2655_v27, %v2042_v29 }
  0x6a   :  { %985 = vmatpush.bf16.msra.mxu0 %v1897_v10  ;;  %v1949_v10 = vor.u32 %v2631_v1, %v1946_v2  ;;  %v2298_v33 = vld [vmem:[#allocation5 + $0x398] sm:$0xf0]  ;;  %v2173_v36 = vor.u32 %v2687_v30, %v2170_v31  ;;  %v2651_v39 = vld [vmem:[#allocation5 + $0x16c] sm:$0xf] }
  0x6b   :  { %998 = vmatpush.bf16.msra.mxu1 %v2025_v11  ;;  %v2077_v11 = vor.u32 %v2663_v3, %v2074_v5  ;;  %v2301_v40 = vor.u32 %v2719_v32, %v2298_v33  ;;  %v2026_v41 = vld [vmem:[#allocation5 + $0x178] sm:$0xf0]  ;;  %v2715_v44 = vld [vmem:[#allocation5 + $0x36c] sm:$0xf] }
  0x6c   :  { %1011 = vmatpush.bf16.msra.mxu2 %v2153_v12  ;;  %v2205_v12 = vor.u32 %v2695_v6, %v2202_v7  ;;  %v2154_v43 = vld [vmem:[#allocation5 + $0x278] sm:$0xf0]  ;;  %v2029_v47 = vor.u32 %v2651_v39, %v2026_v41  ;;  %v2647_v51 = vld [vmem:[#allocation5 + $0x14c] sm:$0xf] }
  0x6d   :  { %1024 = vmatpush.bf16.msra.mxu3 %v2281_v16  ;;  %v2333_v16 = vor.u32 %v2727_v8, %v2330_v9  ;;  %v2282_v45 = vld [vmem:[#allocation5 + $0x378] sm:$0xf0]  ;;  %v2711_v58 = vld [vmem:[#allocation5 + $0x34c] sm:$0xf] }
  0x6e   :  { %986 = vmatpush.bf16.msra.mxu0 %v1881_v22  ;;  %v1933_v22 = vor.u32 %v2627_v13, %v1930_v14  ;;  %v1882_v50 = vld [vmem:[#allocation5 + $0x58] sm:$0xf0]  ;;  %v2285_v52 = vor.u32 %v2715_v44, %v2282_v45  ;;  %v2611_v1 = vld [vmem:[#allocation5 + $0x2c] sm:$0xf] }
  0x6f   :  { %999 = vmatpush.bf16.msra.mxu1 %v2009_v23  ;;  %v2061_v23 = vor.u32 %v2659_v15, %v2058_v17  ;;  %v2138_v56 = vld [vmem:[#allocation5 + $0x258] sm:$0xf0]  ;;  %v2643_v3 = vld [vmem:[#allocation5 + $0x12c] sm:$0xf] }
  0x70   :  { %1012 = vmatpush.bf16.msra.mxu2 %v2137_v24  ;;  %v2189_v24 = vor.u32 %v2691_v18, %v2186_v19  ;;  %v1866_v2 = vld [vmem:[#allocation5 + $0x38] sm:$0xf0]  ;;  %v2675_v6 = vld [vmem:[#allocation5 + $0x22c] sm:$0xf] }
  0x71   :  { %1025 = vmatpush.bf16.msra.mxu3 %v2265_v28  ;;  %v2317_v28 = vor.u32 %v2723_v20, %v2314_v21  ;;  %v1994_v5 = vld [vmem:[#allocation5 + $0x138] sm:$0xf0]  ;;  %v2707_v8 = vld [vmem:[#allocation5 + $0x32c] sm:$0xf] }
  0x72   :  { %987 = vmatpush.bf16.msra.mxu0 %v1865_v34  ;;  %v1917_v34 = vor.u32 %v2623_v25, %v1914_v26  ;;  %v2122_v7 = vld [vmem:[#allocation5 + $0x238] sm:$0xf0]  ;;  %v2607_v13 = vld [vmem:[#allocation5 + $0xc] sm:$0xf] }
  0x73   :  { %1000 = vmatpush.bf16.msra.mxu1 %v1993_v37  ;;  %v2619_v37 = vld [vmem:[#allocation5 + $0x6c] sm:$0xf]  ;;  %v2250_v9 = vld [vmem:[#allocation5 + $0x338] sm:$0xf0] }
  0x74   :  { %1013 = vmatpush.bf16.msra.mxu2 %v2121_v38  ;;  %v1898_v38 = vld [vmem:[#allocation5 + $0x78] sm:$0xf0]  ;;  %v2639_v15 = vld [vmem:[#allocation5 + $0x10c] sm:$0xf] }
  0x75   :  { %1026 = vmatpush.bf16.msra.mxu3 %v2249_v42  ;;  %v2683_v42 = vld [vmem:[#allocation5 + $0x26c] sm:$0xf]  ;;  %v1901_v46 = vor.u32 %v2619_v37, %v1898_v38  ;;  %v1850_v14 = vld [vmem:[#allocation5 + $0x18] sm:$0xf0] }
  0x76   :  { %988 = vmatpush.bf16.msra.mxu0 %v1849_v49  ;;  %v2157_v48 = vor.u32 %v2683_v42, %v2154_v43  ;;  %v2615_v49 = vld [vmem:[#allocation5 + $0x4c] sm:$0xf]  ;;  %v1978_v17 = vld [vmem:[#allocation5 + $0x118] sm:$0xf0] }
  0x77   :  { %1001 = vmatpush.bf16.msra.mxu1 %v1977_v54  ;;  %v2010_v54 = vld [vmem:[#allocation5 + $0x158] sm:$0xf0]  ;;  %v2671_v18 = vld [vmem:[#allocation5 + $0x20c] sm:$0xf] }
  0x78   :  { %1014 = vmatpush.bf16.msra.mxu2 %v2105_v55  ;;  %v2679_v55 = vld [vmem:[#allocation5 + $0x24c] sm:$0xf]  ;;  %v2106_v19 = vld [vmem:[#allocation5 + $0x218] sm:$0xf0] }
  0x79   :  { %1027 = vmatpush.bf16.msra.mxu3 %v2233_v59  ;;  %989 = vmatmul.bf16.vlgmr.msra.gmra.mxu0 %v3035_v60  ;;  %v2266_v59 = vld [vmem:[#allocation5 + $0x358] sm:$0xf0]  ;;  %v2703_v20 = vld [vmem:[#allocation5 + $0x30c] sm:$0xf] }
  0x7a   :  { %1033 = vmatpush.bf16.msrb.mxu0 %v1965_v61  ;;  %1002 = vmatmul.bf16.vlgmr.msra.gmra.mxu1 %v3037_v62  ;;  %v1885_v61 = vor.u32 %v2615_v49, %v1882_v50  ;;  %v2234_v21 = vld [vmem:[#allocation5 + $0x318] sm:$0xf0] }
  0x7b   :  { %1046 = vmatpush.bf16.msrb.mxu1 %v2093_v63  ;;  %1015 = vmatmul.bf16.vlgmr.msra.gmra.mxu2 %v3031_v53  ;;  %v2013_v63 = vor.u32 %v2647_v51, %v2010_v54  ;;  %v2237_v25 = vor.u32 %v2703_v20, %v2234_v21 }
  0x7c   :  { %1059 = vmatpush.bf16.msrb.mxu2 %v2221_v0  ;;  %1028 = vmatmul.bf16.vlgmr.msra.gmra.mxu3 %v3033_v57  ;;  %v2141_v0 = vor.u32 %v2679_v55, %v2138_v56 }
  0x7d   :  { %1072 = vmatpush.bf16.msrb.mxu3 %v2349_v4  ;;  %v2269_v4 = vor.u32 %v2711_v58, %v2266_v59 }
  0x7e   :  { %1034 = vmatpush.bf16.msrb.mxu0 %v1949_v10  ;;  %v1869_v10 = vor.u32 %v2611_v1, %v1866_v2 }
  0x7f   :  { %1047 = vmatpush.bf16.msrb.mxu1 %v2077_v11  ;;  %v1997_v11 = vor.u32 %v2643_v3, %v1994_v5 }
  0x80   :  { %1060 = vmatpush.bf16.msrb.mxu2 %v2205_v12  ;;  %v2125_v12 = vor.u32 %v2675_v6, %v2122_v7 }
  0x81   :  { %1073 = vmatpush.bf16.msrb.mxu3 %v2333_v16  ;;  %v2253_v16 = vor.u32 %v2707_v8, %v2250_v9 }
  0x82   :  { %1035 = vmatpush.bf16.msrb.mxu0 %v1933_v22  ;;  %v1853_v22 = vor.u32 %v2607_v13, %v1850_v14 }
  0x83   :  { %1048 = vmatpush.bf16.msrb.mxu1 %v2061_v23  ;;  %v1981_v23 = vor.u32 %v2639_v15, %v1978_v17 }
  0x84   :  { %1061 = vmatpush.bf16.msrb.mxu2 %v2189_v24  ;;  %v2109_v24 = vor.u32 %v2671_v18, %v2106_v19 }
  0x85   :  { %1074 = vmatpush.bf16.msrb.mxu3 %v2317_v28 }
  0x86   :  { %1036 = vmatpush.bf16.msrb.mxu0 %v1917_v34 }
  0x87   :  { %1049 = vmatpush.bf16.msrb.mxu1 %v2045_v35 }
  0x88   :  { %1062 = vmatpush.bf16.msrb.mxu2 %v2173_v36 }
  0x89   :  { %1075 = vmatpush.bf16.msrb.mxu3 %v2301_v40 }
  0x8a   :  { %1037 = vmatpush.bf16.msrb.mxu0 %v1901_v46 }
  0x8b   :  { %1050 = vmatpush.bf16.msrb.mxu1 %v2029_v47 }
  0x8c   :  { %1063 = vmatpush.bf16.msrb.mxu2 %v2157_v48 }
  0x8d   :  { %1076 = vmatpush.bf16.msrb.mxu3 %v2285_v52 }
  0x8e   :  { %1038 = vmatpush.bf16.msrb.mxu0 %v1885_v61 }
  0x8f   :  { %1051 = vmatpush.bf16.msrb.mxu1 %v2013_v63 }
  0x90   :  { %1064 = vmatpush.bf16.msrb.mxu2 %v2141_v0 }
  0x91   :  { %1077 = vmatpush.bf16.msrb.mxu3 %v2269_v4 }
  0x92   :  { %1039 = vmatpush.bf16.msrb.mxu0 %v1869_v10 }
  0x93   :  { %1052 = vmatpush.bf16.msrb.mxu1 %v1997_v11 }
  0x94   :  { %1065 = vmatpush.bf16.msrb.mxu2 %v2125_v12 }
  0x95   :  { %1078 = vmatpush.bf16.msrb.mxu3 %v2253_v16 }
  0x96   :  { %1040 = vmatpush.bf16.msrb.mxu0 %v1853_v22 }
  0x97   :  { %1053 = vmatpush.bf16.msrb.mxu1 %v1981_v23 }
  0x98   :  { %1066 = vmatpush.bf16.msrb.mxu2 %v2109_v24 }
  0x99   :  { %1079 = vmatpush.bf16.msrb.mxu3 %v2237_v25  ;;  %1041 = vmatmul.bf16.vlgmr.msrb.gmra.mxu0 %v3035_v60 }
  0x9a   :  { %1054 = vmatmul.bf16.vlgmr.msrb.gmra.mxu1 %v3037_v62 }
  0x9b   :  { %1067 = vmatmul.bf16.vlgmr.msrb.gmra.mxu2 %v3031_v53 }
  0x9c   :  { %1080 = vmatmul.bf16.vlgmr.msrb.gmra.mxu3 %v3033_v57  ;;  %v2984_v57 = vmov 8.0  }
  0x9d   :  { %2809 = vrcp.f32 %v2984_v57  ;;  %v2781_v57 = vld [vmem:[#allocation8 + $0x174] sm:$0xf0] }
  0xa3   :  { %v2810_v46 = vpop.eup %2809 }
  0xa4   :  { %v1110_v48 = vmul.f32 8.0, %v2810_v46  ;;  %vm1114_vm0 = vweird.f32 %v2810_v46 }
  0xa6   :  { %v1111_v51 = vsub.f32 1.0, %v1110_v48 }
  0xa8   :  { %v1112_v55 = vmul.f32 %v2810_v46, %v1111_v51  ;;  %v2400_v51 = vld [vmem:[#allocation8 + $0x60] sm:$0xf] }
  0xaa   :  { %v1113_v59 = vadd.f32 %v2810_v46, %v1112_v55 }
  0xac   :  { %v3055_v3 = vsel %vm1114_vm0, %v2810_v46, %v1113_v59  ;;  %v2797_v46 = vld [vmem:[#allocation8 + $0x1f4] sm:$0xf0]  ;;  %v2528_v59 = vld [vmem:[#allocation8 + $0x160] sm:$0xf] }
  0xba   :  { %v886_v26 = vpop.f32.mrf.mxu0 }
  0xbb   :  { %v899_v27 = vpop.f32.mrf.mxu1 }
  0xbc   :  { %v900_v28 = vadd.f32 %v899_v27, %v886_v26 }
  0xbe   :  { %v912_v29 = vpop.f32.mrf.mxu2 }
  0xbf   :  { %v913_v30 = vadd.f32 %v912_v29, %v900_v28  ;;  %v925_v31 = vpop.f32.mrf.mxu3 }
  0xc1   :  { %v926_v32 = vadd.f32 %v925_v31, %v913_v30 }
  0xc2   :  { %v888_v33 = vpop.f32.mrf.mxu0 }
  0xc3   :  { %v901_v34 = vpop.f32.mrf.mxu1  ;;  %v1085_v49 = vrot.slane %v926_v32, 4 }
  0xc5   :  { %v1086_v52 = vadd.f32 %v1085_v49, %v926_v32 }
  0xc6   :  { %v914_v35 = vpop.f32.mrf.mxu2 }
  0xc7   :  { %v927_v36 = vpop.f32.mrf.mxu3  ;;  %v1087_v56 = vrot.slane %v1086_v52, 2 }
  0xc9   :  { %v1088_v63 = vadd.f32 %v1087_v56, %v1086_v52  ;;  %v2747_v52 = vld [vmem:[#allocation8 + $0x64] sm:$0xf0] }
  0xca   :  { %v2401_v56 = vor.u32 %v2747_v52, %v2400_v51  ;;  %v2757_v52 = vld [vmem:[#allocation8 + $0xb4] sm:$0xf0] }
  0xcb   :  { %v1089_v4 = vrot.slane %v1088_v63, 1 }
  0xcd   :  { %v1090_v11 = vadd.f32 %v1089_v4, %v1088_v63 }
  0xcf   :  { %v1116_v16 = vmul.f32 %v3055_v3, %v1090_v11 }
  0xd1   :  { %v3063_v22 = vsub.f32 %v926_v32, %v1116_v16  ;;  %v2456_v16 = vld [vmem:[#allocation8 + $0xd0] sm:$0xf] }
  0xd3   :  { %v1124_v26 = vmul.f32 %v3063_v22, %v3063_v22 }
  0xd5   :  { %v1128_v30 = vrot.slane %v1124_v26, 4 }
  0xd6   :  { %v938_v37 = vpop.f32.mrf.mxu0 }
  0xd7   :  { %v951_v38 = vpop.f32.mrf.mxu1  ;;  %v1129_v32 = vadd.f32 %v1128_v30, %v1124_v26  ;;  %v2793_v30 = vld [vmem:[#allocation8 + $0x1d4] sm:$0xf0] }
  0xd8   :  { %v952_v60 = vadd.f32 %v951_v38, %v938_v37 }
  0xde   :  { %v964_v39 = vpop.f32.mrf.mxu2  ;;  %v940_v41 = vpop.f32.mrf.mxu0 }
  0xdf   :  { %v965_v62 = vadd.f32 %v964_v39, %v952_v60  ;;  %v977_v40 = vpop.f32.mrf.mxu3  ;;  %v953_v42 = vpop.f32.mrf.mxu1  ;;  %v2408_v60 = vld [vmem:[#allocation8 + $0x70] sm:$0xf]  ;;  %v2749_v39 = vld [vmem:[#allocation8 + $0x74] sm:$0xf0] }
  0xe0   :  { %v2536_v41 = vld [vmem:[#allocation8 + $0x170] sm:$0xf] }
  0xe1   :  { %v978_v53 = vadd.f32 %v977_v40, %v965_v62  ;;  %v2472_v62 = vld [vmem:[#allocation8 + $0xf0] sm:$0xf]  ;;  %v2409_v40 = vor.u32 %v2749_v39, %v2408_v60  ;;  %v2512_v60 = vld [vmem:[#allocation8 + $0x140] sm:$0xf] }
  0xe3   :  { %v1091_v43 = vrot.slane %v978_v53, 4  ;;  %1636 = vmatpush.bf16.msra.mxu0 %v2409_v40 }
  0xe5   :  { %v1092_v47 = vadd.f32 %v1091_v43, %v978_v53 }
  0xe6   :  { %v966_v44 = vpop.f32.mrf.mxu2 }
  0xe7   :  { %v979_v45 = vpop.f32.mrf.mxu3  ;;  %v1093_v50 = vrot.slane %v1092_v47, 2  ;;  %v2537_v44 = vor.u32 %v2781_v57, %v2536_v41  ;;  %1637 = vmatpush.bf16.msra.mxu0 %v2401_v56  ;;  %v2576_v41 = vld [vmem:[#allocation8 + $0x1c0] sm:$0xf] }
  0xe8   :  { %v2600_v45 = vld [vmem:[#allocation8 + $0x1f0] sm:$0xf] }
  0xe9   :  { %v1094_v54 = vadd.f32 %v1093_v50, %v1092_v47  ;;  %v1130_v47 = vrot.slane %v1129_v32, 2  ;;  %v2601_v50 = vor.u32 %v2797_v46, %v2600_v45  ;;  %1662 = vmatpush.bf16.msra.mxu2 %v2537_v44  ;;  %v2791_v45 = vld [vmem:[#allocation8 + $0x1c4] sm:$0xf0] }
  0xeb   :  { %v1095_v58 = vrot.slane %v1094_v54, 1  ;;  %1675 = vmatpush.bf16.msra.mxu3 %v2601_v50  ;;  %v2440_v50 = vld [vmem:[#allocation8 + $0xb0] sm:$0xf] }
  0xed   :  { %v1096_v0 = vadd.f32 %v1095_v58, %v1094_v54  ;;  %v2464_v54 = vld [vmem:[#allocation8 + $0xe0] sm:$0xf]  ;;  %v2763_v58 = vld [vmem:[#allocation8 + $0xe4] sm:$0xf0] }
  0xef   :  { %v1117_v5 = vmul.f32 %v3055_v3, %v1096_v0 }
  0xf1   :  { %v3058_v12 = vsub.f32 %v978_v53, %v1117_v5  ;;  %v2765_v53 = vld [vmem:[#allocation8 + $0xf4] sm:$0xf0]  ;;  %v2592_v5 = vld [vmem:[#allocation8 + $0x1e0] sm:$0xf] }
  0xf2   :  { %v2473_v43 = vor.u32 %v2765_v53, %v2472_v62  ;;  %v2775_v53 = vld [vmem:[#allocation8 + $0x144] sm:$0xf0] }
  0xf3   :  { %v1125_v17 = vmul.f32 %v3058_v12, %v3058_v12  ;;  %v2513_v44 = vor.u32 %v2775_v53, %v2512_v60  ;;  %v2416_v53 = vld [vmem:[#allocation8 + $0x80] sm:$0xf] }
  0xf4   :  { %1649 = vmatpush.bf16.msra.mxu1 %v2473_v43 }
  0xf5   :  { %v1134_v23 = vrot.slane %v1125_v17, 4 }
  0xf6   :  { %v990_v61 = vpop.f32.mrf.mxu0 }
  0xf7   :  { %v1003_v1 = vpop.f32.mrf.mxu1  ;;  %v1135_v27 = vadd.f32 %v1134_v23, %v1125_v17  ;;  %v2761_v17 = vld [vmem:[#allocation8 + $0xd4] sm:$0xf0] }
  0xf8   :  { %v1004_v2 = vadd.f32 %v1003_v1, %v990_v61  ;;  %v2779_v61 = vld [vmem:[#allocation8 + $0x164] sm:$0xf0]  ;;  %v2777_v23 = vld [vmem:[#allocation8 + $0x154] sm:$0xf0] }
  0xf9   :  { %v1136_v31 = vrot.slane %v1135_v27, 2  ;;  %v2529_v4 = vor.u32 %v2779_v61, %v2528_v59  ;;  %v2568_v61 = vld [vmem:[#allocation8 + $0x1b0] sm:$0xf] }
  0xfb   :  { %v1137_v36 = vadd.f32 %v1136_v31, %v1135_v27  ;;  %1663 = vmatpush.bf16.msra.mxu2 %v2529_v4 }
  0xfd   :  { %v1138_v48 = vrot.slane %v1137_v36, 1 }
  0xfe   :  { %v1016_v6 = vpop.f32.mrf.mxu2  ;;  %v992_v10 = vpop.f32.mrf.mxu0 }
  0xff   :  { %v1017_v7 = vadd.f32 %v1016_v6, %v1004_v2  ;;  %v1029_v8 = vpop.f32.mrf.mxu3  ;;  %v1005_v13 = vpop.f32.mrf.mxu1  ;;  %v2465_v2 = vor.u32 %v2763_v58, %v2464_v54  ;;  %v2795_v6 = vld [vmem:[#allocation8 + $0x1e4] sm:$0xf0]  ;;  %v2504_v54 = vld [vmem:[#allocation8 + $0x130] sm:$0xf]  ;;  %v2441_v58 = vor.u32 %v2757_v52, %v2440_v50  ;;  %v2410_v50 = vld [vmem:[#allocation8 + $0x78] sm:$0xf0] }
 0x100   :  { %v2593_v11 = vor.u32 %v2795_v6, %v2592_v5  ;;  %v2368_v5 = vld [vmem:[#allocation8 + $0x20] sm:$0xf]  ;;  %v2739_v6 = vld [vmem:[#allocation8 + $0x24] sm:$0xf0] }
 0x101   :  { %v1030_v9 = vadd.f32 %v1029_v8, %v1017_v7  ;;  %v1131_v7 = vadd.f32 %v1130_v47, %v1129_v32  ;;  %v1139_v8 = vadd.f32 %v1138_v48, %v1137_v36  ;;  %1650 = vmatpush.bf16.msra.mxu1 %v2465_v2  ;;  %v2577_v47 = vor.u32 %v2791_v45, %v2576_v41  ;;  %v2376_v48 = vld [vmem:[#allocation8 + $0x30] sm:$0xf]  ;;  %v2751_v41 = vld [vmem:[#allocation8 + $0x84] sm:$0xf0] }
 0x102   :  { %1676 = vmatpush.bf16.msra.mxu3 %v2593_v11  ;;  %v2771_v11 = vld [vmem:[#allocation8 + $0x124] sm:$0xf0] }
 0x103   :  { %v1097_v14 = vrot.slane %v1030_v9, 4  ;;  %v2767_v45 = vld [vmem:[#allocation8 + $0x104] sm:$0xf0] }
 0x105   :  { %v1098_v15 = vadd.f32 %v1097_v14, %v1030_v9  ;;  %v2392_v14 = vld [vmem:[#allocation8 + $0x50] sm:$0xf] }
 0x106   :  { %v1018_v18 = vpop.f32.mrf.mxu2 }
 0x107   :  { %v1099_v19 = vrot.slane %v1098_v15, 2  ;;  %v1031_v20 = vpop.f32.mrf.mxu3 }
 0x108   :  { %v2457_v20 = vor.u32 %v2761_v17, %v2456_v16  ;;  %v2560_v17 = vld [vmem:[#allocation8 + $0x1a0] sm:$0xf] }
 0x109   :  { %v1100_v21 = vadd.f32 %v1099_v19, %v1098_v15  ;;  %v2745_v15 = vld [vmem:[#allocation8 + $0x54] sm:$0xf0] }
 0x10a   :  { %v2393_v19 = vor.u32 %v2745_v15, %v2392_v14  ;;  %1651 = vmatpush.bf16.msra.mxu1 %v2457_v20 }
 0x10b   :  { %v1101_v24 = vrot.slane %v1100_v21, 1 }
 0x10c   :  { %1638 = vmatpush.bf16.msra.mxu0 %v2393_v19 }
 0x10d   :  { %v1102_v25 = vadd.f32 %v1101_v24, %v1100_v21  ;;  %v2520_v21 = vld [vmem:[#allocation8 + $0x150] sm:$0xf]  ;;  %v1132_v24 = vrot.slane %v1131_v7, 1 }
 0x10e   :  { %v2521_v27 = vor.u32 %v2777_v23, %v2520_v21 }
 0x10f   :  { %v1118_v28 = vmul.f32 %v3055_v3, %v1102_v25  ;;  %v1153_v25 = vmul.f32 %v1139_v8, %v3055_v3  ;;  %v1133_v57 = vadd.f32 %v1132_v24, %v1131_v7  ;;  %v2432_v7 = vld [vmem:[#allocation8 + $0xa0] sm:$0xf]  ;;  %v2369_v8 = vor.u32 %v2739_v6, %v2368_v5  ;;  %v2360_v24 = vld [vmem:[#allocation8 + $0x10] sm:$0xf]  ;;  %v2796_v5 = vld [vmem:[#allocation8 + $0x1f4] sm:$0xf] }
 0x110   :  { %1664 = vmatpush.bf16.msra.mxu2 %v2521_v27  ;;  %v2602_v6 = vld [vmem:[#allocation8 + $0x1f8] sm:$0xf0] }
 0x111   :  { %v3068_v29 = vsub.f32 %v1030_v9, %v1118_v28  ;;  %v2584_v28 = vld [vmem:[#allocation8 + $0x1d0] sm:$0xf] }
 0x113   :  { %v1126_v33 = vmul.f32 %v3068_v29, %v3068_v29 }
 0x114   :  { %1665 = vmatpush.bf16.msra.mxu2 %v2513_v44  ;;  %v2417_v44 = vor.u32 %v2751_v41, %v2416_v53  ;;  %v2586_v53 = vld [vmem:[#allocation8 + $0x1d8] sm:$0xf0]  ;;  %v2742_v41 = vld [vmem:[#allocation8 + $0x44] sm:$0xf] }
 0x115   :  { %v1140_v34 = vrot.slane %v1126_v33, 4 }
 0x116   :  { %v1042_v35 = vpop.f32.mrf.mxu0 }
 0x117   :  { %v1055_v37 = vpop.f32.mrf.mxu1  ;;  %v1141_v38 = vadd.f32 %v1140_v34, %v1126_v33  ;;  %v2585_v33 = vor.u32 %v2793_v30, %v2584_v28  ;;  %v2384_v34 = vld [vmem:[#allocation8 + $0x40] sm:$0xf]  ;;  %v2753_v30 = vld [vmem:[#allocation8 + $0x94] sm:$0xf0] }
 0x118   :  { %v1056_v42 = vadd.f32 %v1055_v37, %v1042_v35  ;;  %v2743_v35 = vld [vmem:[#allocation8 + $0x44] sm:$0xf0]  ;;  %v2448_v37 = vld [vmem:[#allocation8 + $0xc0] sm:$0xf] }
 0x119   :  { %v1142_v49 = vrot.slane %v1141_v38, 2  ;;  %v2385_v36 = vor.u32 %v2743_v35, %v2384_v34  ;;  %1677 = vmatpush.bf16.msra.mxu3 %v2585_v33  ;;  %v2769_v35 = vld [vmem:[#allocation8 + $0x114] sm:$0xf0] }
 0x11b   :  { %v1143_v9 = vadd.f32 %v1142_v49, %v1141_v38  ;;  %v2759_v38 = vld [vmem:[#allocation8 + $0xc4] sm:$0xf0]  ;;  %1639 = vmatpush.bf16.msra.mxu0 %v2385_v36  ;;  %v2741_v49 = vld [vmem:[#allocation8 + $0x34] sm:$0xf0] }
 0x11c   :  { %v2449_v40 = vor.u32 %v2759_v38, %v2448_v37  ;;  %v2377_v51 = vor.u32 %v2741_v49, %v2376_v48  ;;  %v2783_v48 = vld [vmem:[#allocation8 + $0x184] sm:$0xf0]  ;;  %v2748_v49 = vld [vmem:[#allocation8 + $0x74] sm:$0xf] }
 0x11d   :  { %v1144_v26 = vrot.slane %v1143_v9, 1  ;;  %1678 = vmatpush.bf16.msra.mxu3 %v2577_v47 }
 0x11e   :  { %v1068_v55 = vpop.f32.mrf.mxu2  ;;  %v1044_v1 = vpop.f32.mrf.mxu0  ;;  %1652 = vmatpush.bf16.msra.mxu1 %v2449_v40 }
 0x11f   :  { %v1069_v63 = vadd.f32 %v1068_v55, %v1056_v42  ;;  %v1081_v0 = vpop.f32.mrf.mxu3  ;;  %v1057_v10 = vpop.f32.mrf.mxu1  ;;  %v3077_v42 = vadd.f32 1e-05, %v1153_v25  ;;  %v1145_v43 = vadd.f32 %v1144_v26, %v1143_v9  ;;  %v2773_v55 = vld [vmem:[#allocation8 + $0x134] sm:$0xf0]  ;;  %1640 = vmatpush.bf16.msra.mxu0 %v2377_v51  ;;  %v2755_v9 = vld [vmem:[#allocation8 + $0xa4] sm:$0xf0] }
 0x120   :  { %v2505_v59 = vor.u32 %v2773_v55, %v2504_v54  ;;  %v2496_v10 = vld [vmem:[#allocation8 + $0x120] sm:$0xf]  ;;  %v2433_v15 = vor.u32 %v2755_v9, %v2432_v7  ;;  %v2737_v25 = vld [vmem:[#allocation8 + $0x14] sm:$0xf0]  ;;  %v2424_v26 = vld [vmem:[#allocation8 + $0x90] sm:$0xf] }
 0x121   :  { %v3072_v13 = vadd.f32 %v1081_v0, %v1069_v63  ;;  %v2789_v63 = vld [vmem:[#allocation8 + $0x1b4] sm:$0xf0]  ;;  %v1152_v0 = vmul.f32 %v1133_v57, %v3055_v3  ;;  %2811 = vrsqrt.f32 %v3077_v42  ;;  %v1154_v1 = vmul.f32 %v1145_v43, %v3055_v3  ;;  %v2480_v57 = vld [vmem:[#allocation8 + $0x100] sm:$0xf]  ;;  %v2764_v55 = vld [vmem:[#allocation8 + $0xf4] sm:$0xf] }
 0x122   :  { %v2569_v2 = vor.u32 %v2789_v63, %v2568_v61  ;;  %1653 = vmatpush.bf16.msra.mxu1 %v2441_v58  ;;  %1666 = vmatpush.bf16.msra.mxu2 %v2505_v59  ;;  %v2497_v16 = vor.u32 %v2771_v11, %v2496_v10  ;;  %v2361_v28 = vor.u32 %v2737_v25, %v2360_v24  ;;  %v2474_v59 = vld [vmem:[#allocation8 + $0xf8] sm:$0xf0]  ;;  %v2780_v61 = vld [vmem:[#allocation8 + $0x174] sm:$0xf]  ;;  %v2746_v7 = vld [vmem:[#allocation8 + $0x64] sm:$0xf]  ;;  %vm1177_vm1 = vweird.f32 %v3077_v42 }
 0x123   :  { %v1103_v18 = vrot.slane %v3072_v13, 4  ;;  %v3083_v19 = vadd.f32 1e-05, %v1152_v0  ;;  %v3085_v20 = vadd.f32 1e-05, %v1154_v1  ;;  %1641 = vmatpush.bf16.msra.mxu0 %v2369_v8  ;;  %v2425_v34 = vor.u32 %v2753_v30, %v2424_v26 }
 0x124   :  { %1679 = vmatpush.bf16.msra.mxu3 %v2569_v2  ;;  %v2481_v47 = vor.u32 %v2767_v45, %v2480_v57  ;;  %v2413_v58 = vor.u32 %v2748_v49, %v2410_v50  ;;  %v2538_v63 = vld [vmem:[#allocation8 + $0x178] sm:$0xf0]  ;;  %v2477_v2 = vor.u32 %v2764_v55, %v2474_v59  ;;  %v2605_v8 = vor.u32 %v2796_v5, %v2602_v6  ;;  %v2402_v9 = vld [vmem:[#allocation8 + $0x68] sm:$0xf0]  ;;  %v2762_v10 = vld [vmem:[#allocation8 + $0xe4] sm:$0xf] }
 0x125   :  { %v1104_v31 = vadd.f32 %v1103_v18, %v3072_v13  ;;  %v2787_v18 = vld [vmem:[#allocation8 + $0x1a4] sm:$0xf0]  ;;  %2813 = vrsqrt.f32 %v3083_v19  ;;  %v2466_v11 = vld [vmem:[#allocation8 + $0xe8] sm:$0xf0]  ;;  %v2756_v5 = vld [vmem:[#allocation8 + $0xb4] sm:$0xf]  ;;  %vm1187_vm5 = vweird.f32 %v3085_v20  ;;  %vm1167_vm7 = vweird.f32 %v3083_v19 }
 0x126   :  { %v1070_v32 = vpop.f32.mrf.mxu2  ;;  %v2561_v21 = vor.u32 %v2787_v18, %v2560_v17  ;;  %1654 = vmatpush.bf16.msra.mxu1 %v2433_v15  ;;  %1667 = vmatpush.bf16.msra.mxu2 %v2497_v16  ;;  %2815 = vrsqrt.f32 %v3085_v20  ;;  %v2405_v16 = vor.u32 %v2746_v7, %v2402_v9  ;;  %v2469_v17 = vor.u32 %v2762_v10, %v2466_v11  ;;  %v2778_v18 = vld [vmem:[#allocation8 + $0x164] sm:$0xf]  ;;  %v2594_v30 = vld [vmem:[#allocation8 + $0x1e8] sm:$0xf0]  ;;  %v2442_v6 = vld [vmem:[#allocation8 + $0xb8] sm:$0xf0] }
 0x127   :  { %v1105_v39 = vrot.slane %v1104_v31, 2  ;;  %v1083_v62 = vpop.f32.mrf.mxu3  ;;  %v3090_v27 = vpop.eup %2811  ;;  %v2552_v32 = vld [vmem:[#allocation8 + $0x190] sm:$0xf]  ;;  %1642 = vmatpush.bf16.msra.mxu0 %v2361_v28  ;;  %v2794_v28 = vld [vmem:[#allocation8 + $0x1e4] sm:$0xf]  ;;  %v2445_v11 = vor.u32 %v2756_v5, %v2442_v6 }
 0x128   :  { %1680 = vmatpush.bf16.msra.mxu3 %v2561_v21  ;;  %v1172_v38 = vmul.f32 %v3090_v27, %v3077_v42  ;;  %v2735_v62 = vld [vmem:[#allocation8 + $0x4] sm:$0xf0]  ;;  %v2530_v21 = vld [vmem:[#allocation8 + $0x168] sm:$0xf0]  ;;  %v2506_v9 = vld [vmem:[#allocation8 + $0x138] sm:$0xf0]  ;;  %vm1178_vm2 = vweird.f32 %v3090_v27 }
 0x129   :  { %v1106_v46 = vadd.f32 %v1105_v39, %v1104_v31  ;;  %v2488_v31 = vld [vmem:[#allocation8 + $0x110] sm:$0xf]  ;;  %v2352_v39 = vld [vmem:[#allocation8] sm:$0xf]  ;;  %v2533_v26 = vor.u32 %v2778_v18, %v2530_v21  ;;  %v2386_v57 = vld [vmem:[#allocation8 + $0x48] sm:$0xf0] }
 0x12a   :  { %v2489_v36 = vor.u32 %v2769_v35, %v2488_v31  ;;  %1655 = vmatpush.bf16.msra.mxu1 %v2425_v34  ;;  %v2353_v40 = vor.u32 %v2735_v62, %v2352_v39  ;;  %v1173_v51 = vmul.f32 %v3090_v27, %v1172_v38  ;;  %v2744_v31 = vld [vmem:[#allocation8 + $0x54] sm:$0xf]  ;;  %v2597_v34 = vor.u32 %v2794_v28, %v2594_v30  ;;  %v2394_v35 = vld [vmem:[#allocation8 + $0x58] sm:$0xf0]  ;;  %v2514_v50 = vld [vmem:[#allocation8 + $0x148] sm:$0xf0] }
 0x12b   :  { %v1107_v56 = vrot.slane %v1106_v46, 1  ;;  %v2522_v38 = vld [vmem:[#allocation8 + $0x158] sm:$0xf0]  ;;  %v2788_v10 = vld [vmem:[#allocation8 + $0x1b4] sm:$0xf]  ;;  %vm3131_vm3 = vmor %vm1177_vm1, %vm1178_vm2 }
 0x12c   :  { %1668 = vmatpush.bf16.msra.mxu2 %v2489_v36  ;;  %1643 = vmatpush.bf16.msra.mxu0 %v2353_v40  ;;  %v2397_v36 = vor.u32 %v2744_v31, %v2394_v35  ;;  %v2370_v18 = vld [vmem:[#allocation8 + $0x28] sm:$0xf0]  ;;  %v2754_v21 = vld [vmem:[#allocation8 + $0xa4] sm:$0xf] }
 0x12d   :  { %v1108_v4 = vadd.f32 %v1107_v56, %v1106_v46  ;;  %v2544_v46 = vld [vmem:[#allocation8 + $0x180] sm:$0xf]  ;;  %v3099_v56 = vpop.eup %2813  ;;  %v2498_v28 = vld [vmem:[#allocation8 + $0x128] sm:$0xf0]  ;;  %v2786_v30 = vld [vmem:[#allocation8 + $0x1a4] sm:$0xf] }
 0x12e   :  { %1656 = vmatpush.bf16.msra.mxu1 %v2417_v44  ;;  %v2545_v54 = vor.u32 %v2783_v48, %v2544_v46  ;;  %v3101_v0 = vpop.eup %2815  ;;  %v1162_v24 = vmul.f32 %v3099_v56, %v3083_v19  ;;  %v2758_v46 = vld [vmem:[#allocation8 + $0xc4] sm:$0xf]  ;;  %v2562_v31 = vld [vmem:[#allocation8 + $0x1a8] sm:$0xf0]  ;;  %vm1168_vm8 = vweird.f32 %v3099_v56 }
 0x12f   :  { %v1119_v14 = vmul.f32 %v3055_v3, %v1108_v4  ;;  %v2541_v4 = vor.u32 %v2780_v61, %v2538_v63  ;;  %v1182_v25 = vmul.f32 %v3101_v0, %v3085_v20  ;;  %v2774_v48 = vld [vmem:[#allocation8 + $0x144] sm:$0xf]  ;;  %vm1188_vm4 = vweird.f32 %v3101_v0  ;;  %vm1169_vm14 = vmor %vm1167_vm7, %vm1168_vm8 }
 0x130   :  { %1669 = vmatpush.bf16.msra.mxu2 %v2481_v47  ;;  %1688 = vmatpush.bf16.msrb.mxu0 %v2413_v58  ;;  %v2450_v47 = vld [vmem:[#allocation8 + $0xc8] sm:$0xf0]  ;;  %v2517_v58 = vor.u32 %v2774_v48, %v2514_v50  ;;  %v2734_v50 = vld [vmem:[#allocation8 + $0x4] sm:$0xf]  ;;  %vm3147_vm9 = vmor %vm1187_vm5, %vm1188_vm4 }
 0x131   :  { %v3088_v23 = vsub.f32 %v3072_v13, %v1119_v14  ;;  %v2785_v13 = vld [vmem:[#allocation8 + $0x194] sm:$0xf0]  ;;  %v3103_v14 = vmul.f32 0.5, %v1173_v51  ;;  %v1183_v44 = vmul.f32 %v3101_v0, %v1182_v25  ;;  %v2790_v51 = vld [vmem:[#allocation8 + $0x1c4] sm:$0xf]  ;;  %v2453_v55 = vor.u32 %v2758_v46, %v2450_v47 }
 0x132   :  { %v2553_v37 = vor.u32 %v2785_v13, %v2552_v32  ;;  %1701 = vmatpush.bf16.msrb.mxu1 %v2477_v2  ;;  %v2760_v32 = vld [vmem:[#allocation8 + $0xd4] sm:$0xf]  ;;  %v2458_v13 = vld [vmem:[#allocation8 + $0xd8] sm:$0xf0]  ;;  %v2770_v25 = vld [vmem:[#allocation8 + $0x124] sm:$0xf] }
 0x133   :  { %v1127_v33 = vmul.f32 %v3088_v23, %v3088_v23  ;;  %v2461_v62 = vor.u32 %v2760_v32, %v2458_v13  ;;  %v1175_v61 = vsub.f32 1.5, %v3103_v14  ;;  %v1184_v63 = vmul.f32 0.5, %v1183_v44  ;;  %v2740_v2 = vld [vmem:[#allocation8 + $0x34] sm:$0xf]  ;;  %v2554_v44 = vld [vmem:[#allocation8 + $0x198] sm:$0xf0] }
 0x134   :  { %1681 = vmatpush.bf16.msra.mxu3 %v2553_v37  ;;  %1714 = vmatpush.bf16.msrb.mxu2 %v2541_v4  ;;  %v2776_v37 = vld [vmem:[#allocation8 + $0x154] sm:$0xf]  ;;  %v2378_v4 = vld [vmem:[#allocation8 + $0x38] sm:$0xf0]  ;;  %v2782_v20 = vld [vmem:[#allocation8 + $0x184] sm:$0xf] }
 0x135   :  { %v1146_v60 = vrot.slane %v1127_v33, 4  ;;  %1689 = vmatpush.bf16.msrb.mxu0 %v2405_v16  ;;  %v2525_v40 = vor.u32 %v2776_v37, %v2522_v38  ;;  %v2381_v7 = vor.u32 %v2740_v2, %v2378_v4  ;;  %v2570_v16 = vld [vmem:[#allocation8 + $0x1b8] sm:$0xf0]  ;;  %v1176_v32 = vmul.f32 %v3090_v27, %v1175_v61  ;;  %v2736_v37 = vld [vmem:[#allocation8 + $0x14] sm:$0xf] }
 0x136   :  { %1702 = vmatpush.bf16.msrb.mxu1 %v2469_v17  ;;  %v2738_v17 = vld [vmem:[#allocation8 + $0x24] sm:$0xf]  ;;  %v2573_v14 = vor.u32 %v2788_v10, %v2570_v16  ;;  %v2362_v38 = vld [vmem:[#allocation8 + $0x18] sm:$0xf0]  ;;  %v2546_v4 = vld [vmem:[#allocation8 + $0x188] sm:$0xf0] }
 0x137   :  { %v1147_v43 = vadd.f32 %v1146_v60, %v1127_v33  ;;  %v2792_v60 = vld [vmem:[#allocation8 + $0x1d4] sm:$0xf]  ;;  %v2373_v35 = vor.u32 %v2738_v17, %v2370_v18  ;;  %v2365_v48 = vor.u32 %v2736_v37, %v2362_v38  ;;  %v1156_v16 = vld [vmem:[#allocation7] ss:$2 sm:$0xf] }
 0x138   :  { %1682 = vmatpush.bf16.msra.mxu3 %v2545_v54  ;;  %1715 = vmatpush.bf16.msrb.mxu2 %v2533_v26  ;;  %v2589_v45 = vor.u32 %v2792_v60, %v2586_v53  ;;  %v2578_v54 = vld [vmem:[#allocation8 + $0x1c8] sm:$0xf0]  ;;  %v2752_v60 = vld [vmem:[#allocation8 + $0x94] sm:$0xf] }
 0x139   :  { %v1148_v52 = vrot.slane %v1147_v43, 2  ;;  %1690 = vmatpush.bf16.msrb.mxu0 %v2397_v36  ;;  %v2501_v36 = vor.u32 %v2770_v25, %v2498_v28  ;;  %v2768_v53 = vld [vmem:[#allocation8 + $0x114] sm:$0xf] }
 0x13a   :  { %1703 = vmatpush.bf16.msrb.mxu1 %v2461_v62  ;;  %v2565_v62 = vor.u32 %v2786_v30, %v2562_v31 }
 0x13b   :  { %v1149_v1 = vadd.f32 %v1148_v52, %v1147_v43  ;;  %v1163_v43 = vmul.f32 %v3099_v56, %v1162_v24  ;;  %v2389_v52 = vor.u32 %v2742_v41, %v2386_v57  ;;  %v2434_v24 = vld [vmem:[#allocation8 + $0xa8] sm:$0xf0]  ;;  %v2490_v41 = vld [vmem:[#allocation8 + $0x118] sm:$0xf0] }
 0x13c   :  { %1727 = vmatpush.bf16.msrb.mxu3 %v2605_v8  ;;  %1716 = vmatpush.bf16.msrb.mxu2 %v2525_v40  ;;  %v2772_v8 = vld [vmem:[#allocation8 + $0x134] sm:$0xf]  ;;  %v2437_v13 = vor.u32 %v2754_v21, %v2434_v24  ;;  %v2426_v40 = vld [vmem:[#allocation8 + $0x98] sm:$0xf0]  ;;  %v2493_v42 = vor.u32 %v2768_v53, %v2490_v41 }
 0x13d   :  { %v1150_v15 = vrot.slane %v1149_v1, 1  ;;  %v3115_v59 = vmul.f32 0.5, %v1163_v43  ;;  %1691 = vmatpush.bf16.msrb.mxu0 %v2389_v52  ;;  %v2784_v43 = vld [vmem:[#allocation8 + $0x194] sm:$0xf]  ;;  %v2429_v52 = vor.u32 %v2752_v60, %v2426_v40 }
 0x13e   :  { %1704 = vmatpush.bf16.msrb.mxu1 %v2453_v55  ;;  %v2750_v55 = vld [vmem:[#allocation8 + $0x84] sm:$0xf]  ;;  %v2557_v61 = vor.u32 %v2784_v43, %v2554_v44  ;;  %v1230_v21 = vld [vmem:[#allocation7 + $0x1] ss:$2 sm:$0xf] }
 0x13f   :  { %v1151_v33 = vadd.f32 %v1150_v15, %v1149_v1  ;;  %v2581_v1 = vor.u32 %v2790_v51, %v2578_v54  ;;  %v2509_v15 = vor.u32 %v2772_v8, %v2506_v9  ;;  %v1165_v57 = vsub.f32 1.5, %v3115_v59  ;;  %v2354_v54 = vld [vmem:[#allocation8 + $0x8] sm:$0xf0] }
 0x140   :  { %1728 = vmatpush.bf16.msrb.mxu3 %v2597_v34  ;;  %1717 = vmatpush.bf16.msrb.mxu2 %v2517_v58  ;;  %v1180_v51 = vsel %vm3131_vm3, %v3090_v27, %v1176_v32  ;;  %v2418_v58 = vld [vmem:[#allocation8 + $0x88] sm:$0xf0]  ;;  %v1233_v28 = vperm.slane %v1230_v21, 1  ;;  %v1234_v19 = vperm.slane %v1230_v21, 2  ;;  %v1235_v30 = vperm.slane %v1230_v21, 3 }
 0x141   :  { %v1155_v39 = vmul.f32 %v1151_v33, %v3055_v3  ;;  %v1185_v33 = vsub.f32 1.5, %v1184_v63  ;;  %1692 = vmatpush.bf16.msrb.mxu0 %v2381_v7  ;;  %v2766_v63 = vld [vmem:[#allocation8 + $0x104] sm:$0xf]  ;;  %v1166_v2 = vmul.f32 %v3099_v56, %v1165_v57  ;;  %v2357_v7 = vor.u32 %v2734_v50, %v2354_v54 }
 0x142   :  { %1705 = vmatpush.bf16.msrb.mxu1 %v2445_v11  ;;  %v1205_v8 = vrot.slane %v1180_v51, 7  ;;  %v2421_v9 = vor.u32 %v2750_v55, %v2418_v58 }
 0x143   :  { %v3112_v49 = vadd.f32 1e-05, %v1155_v39  ;;  %v1186_v46 = vmul.f32 %v3101_v0, %v1185_v33  ;;  %v1170_v17 = vsel %vm1169_vm14, %v3099_v56, %v1166_v2 }
 0x144   :  { %1729 = vmatpush.bf16.msrb.mxu3 %v2589_v45  ;;  %1718 = vmatpush.bf16.msrb.mxu2 %v2509_v15  ;;  %v1209_v18 = vsel %vm1208_vm12, %v1170_v17, %v1205_v8 }
 0x145   :  { %2817 = vrsqrt.f32 %v3112_v49  ;;  %1693 = vmatpush.bf16.msrb.mxu0 %v2373_v35  ;;  %v1190_v5 = vsel %vm3147_vm9, %v3101_v0, %v1186_v46  ;;  %vm1197_vm10 = vweird.f32 %v3112_v49  ;;  %v2549_v0 = vor.u32 %v2782_v20, %v2546_v4 }
 0x146   :  { %1706 = vmatpush.bf16.msrb.mxu1 %v2437_v13 }
 0x148   :  { %1730 = vmatpush.bf16.msrb.mxu3 %v2581_v1  ;;  %1719 = vmatpush.bf16.msrb.mxu2 %v2501_v36  ;;  %v2482_v1 = vld [vmem:[#allocation8 + $0x108] sm:$0xf0] }
 0x149   :  { %1694 = vmatpush.bf16.msrb.mxu0 %v2365_v48  ;;  %v2485_v10 = vor.u32 %v2766_v63, %v2482_v1 }
 0x14a   :  { %1707 = vmatpush.bf16.msrb.mxu1 %v2429_v52 }
 0x14b   :  { %v3118_v26 = vpop.eup %2817 }
 0x14c   :  { %v1192_v34 = vmul.f32 %v3118_v26, %v3112_v49  ;;  %1731 = vmatpush.bf16.msrb.mxu3 %v2573_v14  ;;  %vm1198_vm6 = vweird.f32 %v3118_v26  ;;  %1720 = vmatpush.bf16.msrb.mxu2 %v2493_v42  ;;  %v1206_v49 = vrot.slane %v1190_v5, 6 }
 0x14d   :  { %vm1199_vm11 = vmor %vm1197_vm10, %vm1198_vm6  ;;  %1695 = vmatpush.bf16.msrb.mxu0 %v2357_v7 }
 0x14e   :  { %v1193_v39 = vmul.f32 %v3118_v26, %v1192_v34  ;;  %1708 = vmatpush.bf16.msrb.mxu1 %v2421_v9 }
 0x150   :  { %v1194_v47 = vmul.f32 0.5, %v1193_v39  ;;  %1732 = vmatpush.bf16.msrb.mxu3 %v2565_v62  ;;  %1721 = vmatpush.bf16.msrb.mxu2 %v2485_v10 }
 0x152   :  { %v1195_v59 = vsub.f32 1.5, %v1194_v47 }
 0x154   :  { %v1196_v6 = vmul.f32 %v3118_v26, %v1195_v59  ;;  %1733 = vmatpush.bf16.msrb.mxu3 %v2557_v61 }
 0x156   :  { %v1200_v11 = vsel %vm1199_vm11, %v3118_v26, %v1196_v6  ;;  %v1232_v26 = vperm.slane %v1230_v21, 0 }
 0x157   :  { %v1207_v15 = vrot.slane %v1200_v11, 5 }
 0x158   :  { %1734 = vmatpush.bf16.msrb.mxu3 %v2549_v0 }
 0x159   :  { %v1211_v14 = vsel %vm1210_vm13, %v1206_v49, %v1207_v15 }
 0x15a   :  { %v1213_v24 = vsel %vm1212_vm15, %v1209_v18, %v1211_v14 }
 0x15b   :  { %v1215_v25 = vmul.f32 %v1213_v24, %v1156_v16 }
 0x15d   :  { %v1220_v31 = vperm.slane %v1215_v25, 3  ;;  %v1217_v33 = vperm.slane %v1215_v25, 0  ;;  %v1218_v34 = vperm.slane %v1215_v25, 1  ;;  %v1219_v35 = vperm.slane %v1215_v25, 2 }
 0x15f   :  { %v1228_v56 = vmul.f32 %v1220_v31, %v3088_v23  ;;  %v1225_v32 = vmul.f32 %v1217_v33, %v3063_v22  ;;  %v1226_v13 = vmul.f32 %v1218_v34, %v3058_v12  ;;  %v1227_v36 = vmul.f32 %v1219_v35, %v3068_v29 }
 0x161   :  { %v1240_v37 = vadd.f32 %v1232_v26, %v1225_v32  ;;  %v1241_v38 = vadd.f32 %v1233_v28, %v1226_v13  ;;  %v1242_v60 = vadd.f32 %v1234_v19, %v1227_v36  ;;  %v1243_v39 = vadd.f32 %v1235_v30, %v1228_v56 }
 0x163   :  { %v1244_v62 = vmax.f32 %v1240_v37, 0.0  ;;  %v1245_v40 = vmax.f32 %v1241_v38, 0.0  ;;  %v1246_v53 = vmax.f32 %v1242_v60, 0.0  ;;  %v1247_v41 = vmax.f32 %v1243_v39, 0.0 }
 0x165   :  { %v1248_v57 = vpack.c.bf16 %v1244_v62, %v1244_v62  ;;  %v1249_v43 = vpack.c.bf16 %v1245_v40, %v1245_v40  ;;  %v1250_v44 = vpack.c.bf16 %v1246_v53, %v1246_v53  ;;  %v1251_v45 = vpack.c.bf16 %v1247_v41, %v1247_v41 }
 0x167   :  { %1644 = vmatmul.bf16.vlgmr.msra.gmra.mxu0 %v1248_v57  ;;  %1657 = vmatmul.bf16.vlgmr.msra.gmra.mxu1 %v1249_v43 }
 0x168   :  { %1670 = vmatmul.bf16.vlgmr.msra.gmra.mxu2 %v1250_v44  ;;  %1683 = vmatmul.bf16.vlgmr.msra.gmra.mxu3 %v1251_v45 }
 0x177   :  { %1696 = vmatmul.bf16.vlgmr.msrb.gmra.mxu0 %v1248_v57  ;;  %1709 = vmatmul.bf16.vlgmr.msrb.gmra.mxu1 %v1249_v43 }
 0x178   :  { %1722 = vmatmul.bf16.vlgmr.msrb.gmra.mxu2 %v1250_v44  ;;  %1735 = vmatmul.bf16.vlgmr.msrb.gmra.mxu3 %v1251_v45 }
 0x1e4   :  { %v1645_v12 = vpop.f32.mrf.mxu0  ;;  %v1658_v22 = vpop.f32.mrf.mxu1 }
 0x1e5   :  { %v1659_v29 = vadd.f32 %v1658_v22, %v1645_v12 }
 0x1eb   :  { %v1671_v23 = vpop.f32.mrf.mxu2  ;;  %v1684_v46 = vpop.f32.mrf.mxu3 }
 0x1ec   :  { %v1672_v47 = vadd.f32 %v1671_v23, %v1659_v29  ;;  %v1647_v48 = vpop.f32.mrf.mxu0  ;;  %v1660_v50 = vpop.f32.mrf.mxu1 }
 0x1ee   :  { %v1685_v51 = vadd.f32 %v1684_v46, %v1672_v47 }
 0x1f0   :  { %v1740_v52 = vrot.slane %v1685_v51, 4 }
 0x1f2   :  { %v1741_v42 = vadd.f32 %v1740_v52, %v1685_v51  ;;  %v1809_v52 = vld [vmem:[#allocation10 + $0x1] ss:$2 sm:$0x3] }
 0x1f3   :  { %v1673_v54 = vpop.f32.mrf.mxu2  ;;  %v1686_v55 = vpop.f32.mrf.mxu3 }
 0x1f4   :  { %v1742_v58 = vrot.slane %v1741_v42, 2  ;;  %v1697_v59 = vpop.f32.mrf.mxu0  ;;  %v1710_v61 = vpop.f32.mrf.mxu1 }
 0x1f5   :  { %v1711_v27 = vadd.f32 %v1710_v61, %v1697_v59  ;;  %v1812_v59 = vperm.slane %v1809_v52, 1 }
 0x1f6   :  { %v1743_v63 = vadd.f32 %v1742_v58, %v1741_v42  ;;  %v1811_v58 = vperm.slane %v1809_v52, 0 }
 0x1f8   :  { %v1744_v1 = vrot.slane %v1743_v63, 1 }
 0x1fa   :  { %v1745_v2 = vadd.f32 %v1744_v1, %v1743_v63 }
 0x1fb   :  { %v1723_v20 = vpop.f32.mrf.mxu2  ;;  %v1736_v4 = vpop.f32.mrf.mxu3 }
 0x1fc   :  { %v1752_v5 = vmul.f32 %v1745_v2, %v3055_v3  ;;  %v1724_v6 = vadd.f32 %v1723_v20, %v1711_v27  ;;  %v1699_v7 = vpop.f32.mrf.mxu0  ;;  %v1712_v8 = vpop.f32.mrf.mxu1 }
 0x1fe   :  { %v1754_v9 = vsub.f32 %v1685_v51, %v1752_v5  ;;  %v1737_v10 = vadd.f32 %v1736_v4, %v1724_v6 }
 0x200   :  { %v1756_v11 = vmul.f32 %v1754_v9, %v1754_v9  ;;  %v1746_v0 = vrot.slane %v1737_v10, 4 }
 0x202   :  { %v1758_v49 = vrot.slane %v1756_v11, 4  ;;  %v1747_v15 = vadd.f32 %v1746_v0, %v1737_v10 }
 0x203   :  { %v1725_v16 = vpop.f32.mrf.mxu2  ;;  %v1738_v17 = vpop.f32.mrf.mxu3 }
 0x204   :  { %v1759_v18 = vadd.f32 %v1758_v49, %v1756_v11  ;;  %v1748_v14 = vrot.slane %v1747_v15, 2 }
 0x206   :  { %v1760_v21 = vrot.slane %v1759_v18, 2  ;;  %v1749_v24 = vadd.f32 %v1748_v14, %v1747_v15 }
 0x208   :  { %v1761_v25 = vadd.f32 %v1760_v21, %v1759_v18  ;;  %v1750_v26 = vrot.slane %v1749_v24, 1 }
 0x20a   :  { %v1762_v28 = vrot.slane %v1761_v25, 1  ;;  %v1751_v19 = vadd.f32 %v1750_v26, %v1749_v24 }
 0x20c   :  { %v1763_v30 = vadd.f32 %v1762_v28, %v1761_v25  ;;  %v1753_v31 = vmul.f32 %v1751_v19, %v3055_v3 }
 0x20e   :  { %v1755_v33 = vsub.f32 %v1737_v10, %v1753_v31  ;;  %v1770_v34 = vmul.f32 %v1763_v30, %v3055_v3 }
 0x210   :  { %v1757_v35 = vmul.f32 %v1755_v33, %v1755_v33  ;;  %v1773_v32 = vadd.f32 1e-05, %v1770_v34 }
 0x212   :  { %v1764_v56 = vrot.slane %v1757_v35, 4  ;;  %2819 = vrsqrt.f32 %v1773_v32  ;;  %vm1781_vm4 = vweird.f32 %v1773_v32 }
 0x214   :  { %v1765_v13 = vadd.f32 %v1764_v56, %v1757_v35 }
 0x216   :  { %v1766_v36 = vrot.slane %v1765_v13, 2 }
 0x218   :  { %v1767_v37 = vadd.f32 %v1766_v36, %v1765_v13  ;;  %v2820_v39 = vpop.eup %2819 }
 0x219   :  { %v1776_v53 = vmul.f32 %v2820_v39, %v1773_v32  ;;  %vm1782_vm1 = vweird.f32 %v2820_v39 }
 0x21a   :  { %v1768_v38 = vrot.slane %v1767_v37, 1  ;;  %vm1783_vm5 = vmor %vm1781_vm4, %vm1782_vm1 }
 0x21b   :  { %v1777_v41 = vmul.f32 %v2820_v39, %v1776_v53 }
 0x21c   :  { %v1769_v60 = vadd.f32 %v1768_v38, %v1767_v37 }
 0x21d   :  { %v1778_v43 = vmul.f32 0.5, %v1777_v41 }
 0x21e   :  { %v1771_v62 = vmul.f32 %v1769_v60, %v3055_v3  ;;  %v1772_v3 = vld [vmem:[#allocation10] ss:$2 sm:$0x3] }
 0x21f   :  { %v1779_v12 = vsub.f32 1.5, %v1778_v43 }
 0x220   :  { %v1774_v40 = vadd.f32 1e-05, %v1771_v62 }
 0x221   :  { %v1780_v23 = vmul.f32 %v2820_v39, %v1779_v12 }
 0x222   :  { %2821 = vrsqrt.f32 %v1774_v40  ;;  %vm1791_vm2 = vweird.f32 %v1774_v40 }
 0x223   :  { %v1784_v50 = vsel %vm1783_vm5, %v2820_v39, %v1780_v23 }
 0x228   :  { %v2822_v57 = vpop.eup %2821 }
 0x229   :  { %v1786_v44 = vmul.f32 %v2822_v57, %v1774_v40  ;;  %vm1792_vm0 = vweird.f32 %v2822_v57 }
 0x22a   :  { %vm1793_vm3 = vmor %vm1791_vm2, %vm1792_vm0 }
 0x22b   :  { %v1787_v45 = vmul.f32 %v2822_v57, %v1786_v44 }
 0x22d   :  { %v1788_v22 = vmul.f32 0.5, %v1787_v45 }
 0x22f   :  { %v1789_v29 = vsub.f32 1.5, %v1788_v22 }
 0x231   :  { %v1790_v46 = vmul.f32 %v2822_v57, %v1789_v29 }
 0x233   :  { %v1794_v47 = vsel %vm1793_vm3, %v2822_v57, %v1790_v46 }
 0x234   :  { %v1797_v48 = vrot.slane %v1794_v47, 7 }
 0x236   :  { %v1798_v51 = vsel %vm1208_vm12, %v1784_v50, %v1797_v48 }
 0x237   :  { %v1800_v42 = vmul.f32 %v1798_v51, %v1772_v3 }
 0x239   :  { %v1803_v54 = vperm.slane %v1800_v42, 1  ;;  %v1802_v55 = vperm.slane %v1800_v42, 0 }
 0x23b   :  { %v1807_v61 = vmul.f32 %v1803_v54, %v1755_v33  ;;  %v1806_v63 = vmul.f32 %v1802_v55, %v1754_v9 }
 0x23d   :  { %v1815_v1 = vadd.f32 %v1811_v58, %v1806_v63  ;;  %v1816_v2 = vadd.f32 %v1812_v59, %v1807_v61 }
 0x23f   :  { %1817 = vst [vmem:[#allocation11] sm:$0xff] %v1815_v1 }
 0x240   :  { %1818 = vst [vmem:[#allocation11 + $0x8] sm:$0xff] %v1816_v2 }
 0x241   :  { %1829 = dma.vmem_to_hbm [thread:$0]  %s1825_s4, 256, %s1827_s21, [#allocation4]  }
 0x242   :  { %2973 = dma.done.wait [#allocation4], 256  }
 0x243   :  { %2974 = vsyncadd [#allocation4], 4294967040 }
 0x244   :  { %1834 = vsyncpa [#allocation3], 1 }
 0x245   :  { %1835 = vsyncpa [#allocation6], 1 }
 0x246   :  { %1836 = vsyncpa [#allocation9], 1 }
 0x247   :  { %1837 = vsyncpa [#allocation4], 1 }

</bundles_post_ra>
